<compile_context>
chip_gen: v5e
topology: v5e:2x2
jax: 0.10.0
libtpu: 0.0.40
codegen_flags: <defaults>
</compile_context>

<pallas_src>
import functools

import jax
import jax.numpy as jnp
from jax import lax
from jax.experimental import pallas as pl
from jax.experimental.pallas import tpu as pltpu


def _round_up(x, m):
    return (x + m - 1) // m * m


# ----------------------------------------------------------------------------
# Fused kernel: layer-0 input projection + multi-layer LSTM recurrence + FC
# on the last (valid) timestep.
# Grid: (batch_tiles ["parallel"], time_tiles ["arbitrary"]).  Hidden/cell
# state for every layer lives in VMEM scratch across the sequential time axis.
# ----------------------------------------------------------------------------
def _fused_lstm_fc_kernel(x_ref, wih0_ref, b0_ref, whh_ref, wihr_ref, brr_ref,
                          h0_ref, c0_ref, fcw_ref, fcb_ref,
                          hn_ref, cn_ref, logits_ref,
                          h_sc, c_sc, gx_sc,
                          *, hidden_dim, n_layers, t_tile, t_valid, t_total,
                          unroll):
    H = hidden_dim
    L = n_layers
    BT = h0_ref.shape[1]
    t_idx = pl.program_id(1)
    mdtype = whh_ref.dtype                 # bf16 (or f32) matmul operand dtype
    needs_mask = t_valid < t_total         # static: T was padded up

    @pl.when(t_idx == 0)
    def _():
        h_sc[...] = h0_ref[...]
        c_sc[...] = c0_ref[...]

    # ---- Fused layer-0 input projection for the whole time tile ------------
    # One lane-dense (t_tile*BT, E) @ (E, 4H) GEMM off the recurrent critical
    # path; bias (b_ih0 + b_hh0) folded in.  Result parked in VMEM scratch.
    x_flat = x_ref[...].reshape(t_tile * BT, x_ref.shape[-1])
    gx_sc[...] = (jnp.dot(x_flat, wih0_ref[...],
                          preferred_element_type=jnp.float32)
                  + b0_ref[...])

    # ---- Hoist loop-invariant weight loads out of the recurrence -----------
    whh = [whh_ref[l] for l in range(L)]          # (H, 4H) each
    wihr = [wihr_ref[l] for l in range(L - 1)]    # inter-layer W_ih^T (l>=1)
    brr = [brr_ref[l] for l in range(L - 1)]      # inter-layer bias   (l>=1)

    def lstm_cell(gates, c_prev):
        if H < 128:
            # (BT, 4H) is lane-dense while a (BT, H) slice is not: run the
            # transcendentals once full-width (2 EUP passes) and slice after.
            sig = jax.nn.sigmoid(gates)
            tnh = jnp.tanh(gates)
            i_g, f_g, o_g = sig[:, :H], sig[:, H:2 * H], sig[:, 3 * H:]
            g_g = tnh[:, 2 * H:3 * H]
        else:
            i_g = jax.nn.sigmoid(gates[:, :H])
            f_g = jax.nn.sigmoid(gates[:, H:2 * H])
            g_g = jnp.tanh(gates[:, 2 * H:3 * H])
            o_g = jax.nn.sigmoid(gates[:, 3 * H:])
        c_new = f_g * c_prev + i_g * g_g
        h_new = o_g * jnp.tanh(c_new)
        return h_new, c_new

    def timestep(i, carry):
        hs, cs = carry
        row = pl.multiple_of(i * BT, BT)
        gates_x = gx_sc[pl.ds(row, BT), :]                 # (BT, 4H) f32
        new_hs, new_cs = [], []
        for l in range(L):
            gates = gates_x + jnp.dot(hs[l].astype(mdtype), whh[l],
                                      preferred_element_type=jnp.float32)
            h_new, c_new = lstm_cell(gates, cs[l])
            if needs_mask:
                valid = (t_idx * t_tile + i) < t_valid
                h_new = jnp.where(valid, h_new, hs[l])
                c_new = jnp.where(valid, c_new, cs[l])
            new_hs.append(h_new)
            new_cs.append(c_new)
            if l + 1 < L:
                # Inter-layer activation stays in registers/VMEM; inter-layer
                # dropout is identity in eval mode.
                gates_x = (jnp.dot(h_new.astype(mdtype), wihr[l],
                                   preferred_element_type=jnp.float32)
                           + brr[l])
        return tuple(new_hs), tuple(new_cs)

    carry0 = (tuple(h_sc[l] for l in range(L)),
              tuple(c_sc[l] for l in range(L)))
    hs, cs = lax.fori_loop(0, t_tile, timestep, carry0,
                           unroll=min(unroll, t_tile))

    for l in range(L):
        h_sc[l] = hs[l]
        c_sc[l] = cs[l]

    @pl.when(t_idx == pl.num_programs(1) - 1)
    def _():
        for l in range(L):
            hn_ref[l] = hs[l]
            cn_ref[l] = cs[l]
        # Fused FC: only the last valid timestep's logits are needed
        # (out.view(B, -1)[:, -3:] with output_size == 3).
        logits_ref[...] = (jnp.dot(hs[L - 1].astype(mdtype), fcw_ref[...],
                                   preferred_element_type=jnp.float32)
                           + fcb_ref[...])


def lstm_stack_fc(x_tbd, wih0_t, bias0, whh_all, wih_rest, b_rest,
                  h0, c0, fcw_t, fcb, *, t_valid, time_tile, batch_tile,
                  unroll, vmem_limit_bytes):
    T_pad, B_pad, E = x_tbd.shape
    L, H, G = whh_all.shape
    Lr = wih_rest.shape[0]
    O_pad = fcw_t.shape[1]
    BT = batch_tile
    assert B_pad % BT == 0 and T_pad % time_tile == 0

    kernel = functools.partial(
        _fused_lstm_fc_kernel, hidden_dim=H, n_layers=L, t_tile=time_tile,
        t_valid=t_valid, t_total=T_pad, unroll=unroll)

    # TODO(synk): on v7x the grid-invariant weight blocks below would ideally
    # be single-buffered (pipeline_mode=pl.Buffered(1)) to save VMEM at large H.
    return pl.pallas_call(
        kernel,
        out_shape=(
            jax.ShapeDtypeStruct((L, B_pad, H), jnp.float32),
            jax.ShapeDtypeStruct((L, B_pad, H), jnp.float32),
            jax.ShapeDtypeStruct((B_pad, O_pad), jnp.float32),
        ),
        grid_spec=pltpu.PrefetchScalarGridSpec(
            num_scalar_prefetch=0,
            grid=(B_pad // BT, T_pad // time_tile),
            in_specs=[
                pl.BlockSpec((time_tile, BT, E), lambda b, t: (t, b, 0)),  # x
                pl.BlockSpec((E, G), lambda b, t: (0, 0)),         # W_ih^T l0
                pl.BlockSpec((1, G), lambda b, t: (0, 0)),         # bias   l0
                pl.BlockSpec((L, H, G), lambda b, t: (0, 0, 0)),   # W_hh^T all
                pl.BlockSpec((Lr, H, G), lambda b, t: (0, 0, 0)),  # W_ih^T l>=1
                pl.BlockSpec((Lr, 1, G), lambda b, t: (0, 0, 0)),  # bias   l>=1
                pl.BlockSpec((L, BT, H), lambda b, t: (0, b, 0)),  # h0
                pl.BlockSpec((L, BT, H), lambda b, t: (0, b, 0)),  # c0
                pl.BlockSpec((H, O_pad), lambda b, t: (0, 0)),     # fc W^T
                pl.BlockSpec((1, O_pad), lambda b, t: (0, 0)),     # fc b
            ],
            out_specs=[
                pl.BlockSpec((L, BT, H), lambda b, t: (0, b, 0)),  # h_n
                pl.BlockSpec((L, BT, H), lambda b, t: (0, b, 0)),  # c_n
                pl.BlockSpec((BT, O_pad), lambda b, t: (b, 0)),    # logits
            ],
            scratch_shapes=[
                pltpu.VMEM((L, BT, H), jnp.float32),               # h state
                pltpu.VMEM((L, BT, H), jnp.float32),               # c state
                pltpu.VMEM((time_tile * BT, G), jnp.float32),      # l0 gates
            ],
        ),
        compiler_params=pltpu.CompilerParams(
            dimension_semantics=("parallel", "arbitrary"),
            vmem_limit_bytes=vmem_limit_bytes),
    )(x_tbd, wih0_t, bias0, whh_all, wih_rest, b_rest, h0, c0, fcw_t, fcb)


# ----------------------------------------------------------------------------
# SentimentRNN forward (eval mode)
# ----------------------------------------------------------------------------
def sentiment_rnn_forward(params, x_tokens, hidden, *, time_tile=None,
                          batch_tile=128, matmul_dtype=jnp.bfloat16,
                          unroll=8):
    """
    x_tokens : (B, T) int32 token ids
    hidden   : tuple (h0, c0), each (n_layers, B, H)
    returns (out, (h_n, c_n)) with out shape (B, 3)
    """
    B, T = x_tokens.shape
    h0_all, c0_all = hidden
    L, _, H = h0_all.shape
    E = params["embedding"].shape[1]
    O = params["fc_w"].shape[0]
    G = 4 * H

    # `out.view(B, -1)[:, -3:]` equals the last timestep's FC logits because
    # output_size == 3, so only that timestep's FC is computed.
    assert O == 3, "kernel assumes output_size == 3 (matches the [:, -3:] slice)"
    # TODO(synk): for output_size != 3 the [-3:] slice spans timesteps and
    # would need the full (B*T, O) FC.

    # ---- tile selection -----------------------------------------------------
    mdt = matmul_dtype
    mbytes = jnp.dtype(mdt).itemsize
    sub = 8 if mbytes == 4 else 16            # sublane quantum (packed for bf16)
    B_min = _round_up(B, sub)
    BT = min(_round_up(batch_tile, sub), B_min)
    B_pad = _round_up(B_min, BT)

    if time_tile is None:
        # Big tiles amortize per-grid-step overhead; T is padded (masked) up
        # to a multiple instead of searching for a divisor.
        time_tile = min(64, _round_up(T, 8))
    T_pad = _round_up(T, time_tile)

    # ---- embedding lookup (gather) -- glue in plain JAX ---------------------
    embeds = jnp.take(params["embedding"], x_tokens, axis=0)        # (B, T, E)
    x_tbd = jnp.transpose(embeds, (1, 0, 2)).astype(mdt)            # (T, B, E)
    x_tbd = jnp.pad(x_tbd, ((0, T_pad - T), (0, B_pad - B), (0, 0)))

    # ---- weights: matmul operands in mdt (bf16), biases/state in f32 --------
    wih0_t = jnp.transpose(params["w_ih_l0"]).astype(mdt)            # (E, 4H)
    bias0 = (params["b_ih_l0"] + params["b_hh_l0"]).reshape(1, G)
    bias0 = bias0.astype(jnp.float32)
    whh_all = jnp.stack(
        [jnp.transpose(params[f"w_hh_l{l}"]) for l in range(L)]).astype(mdt)
    if L > 1:
        wih_rest = jnp.stack(
            [jnp.transpose(params[f"w_ih_l{l}"]) for l in range(1, L)]).astype(mdt)
        b_rest = jnp.stack(
            [(params[f"b_ih_l{l}"] + params[f"b_hh_l{l}"]).reshape(1, G)
             for l in range(1, L)]).astype(jnp.float32)
    else:
        # Single dummy slab; never read when L == 1.
        wih_rest = jnp.zeros((1, H, G), mdt)
        b_rest = jnp.zeros((1, 1, G), jnp.float32)

    def pad_state(s):
        return jnp.pad(s.astype(jnp.float32),
                       ((0, 0), (0, B_pad - B), (0, 0)))

    h0p, c0p = pad_state(h0_all), pad_state(c0_all)

    # FC weights padded to a lane-dense 128-wide output slab.
    O_pad = _round_up(O, 128)
    fcw_t = jnp.zeros((H, O_pad), mdt).at[:, :O].set(
        jnp.transpose(params["fc_w"]).astype(mdt))
    fcb = jnp.zeros((1, O_pad), jnp.float32).at[:, :O].set(params["fc_b"])

    # ---- VMEM budget (clamped so tiles also fit v7x's 64 MiB VMEM) ----------
    Lr = wih_rest.shape[0]
    est = (2 * time_tile * BT * E * mbytes                 # double-buffered x
           + time_tile * BT * G * 4                        # gx scratch
           + 2 * (E * G + L * H * G + Lr * H * G + H * O_pad) * mbytes
           + 2 * (G + Lr * G + O_pad) * 4
           + 2 * (6 * L * BT * H + BT * O_pad) * 4)
    vmem_limit = int(min(max(est + (8 << 20), 32 << 20), 56 << 20))

    h_n, c_n, logits = lstm_stack_fc(
        x_tbd, wih0_t, bias0, whh_all, wih_rest, b_rest, h0p, c0p,
        fcw_t, fcb, t_valid=T, time_tile=time_tile, batch_tile=BT,
        unroll=unroll, vmem_limit_bytes=vmem_limit)

    out = logits[:B, :O]                                           # (B, 3)
    return out, (h_n[:, :B], c_n[:, :B])


# ----------------------------------------------------------------------------
# Plain-JAX reference (same math, high-precision matmuls) for cross-checking.
# ----------------------------------------------------------------------------
def _reference_forward(params, x_tokens, hidden):
    hp = jax.lax.Precision.HIGHEST
    B, T = x_tokens.shape
    h_all, c_all = hidden
    L = h_all.shape[0]
    H = h_all.shape[-1]
    embeds = jnp.take(params["embedding"], x_tokens, axis=0)       # (B, T, E)
    layer_in = embeds
    hs, cs = [], []
    for l in range(L):
        w_ih = params[f"w_ih_l{l}"]
        w_hh = params[f"w_hh_l{l}"]
        b = params[f"b_ih_l{l}"] + params[f"b_hh_l{l}"]
        h, c = h_all[l], c_all[l]
        outs = []
        for t in range(T):
            x_t = layer_in[:, t, :]
            gates = (jnp.dot(x_t, w_ih.T, precision=hp)
                     + jnp.dot(h, w_hh.T, precision=hp) + b)
            i_g = jax.nn.sigmoid(gates[:, :H])
            f_g = jax.nn.sigmoid(gates[:, H:2 * H])
            g_g = jnp.tanh(gates[:, 2 * H:3 * H])
            o_g = jax.nn.sigmoid(gates[:, 3 * H:])
            c = f_g * c + i_g * g_g
            h = o_g * jnp.tanh(c)
            outs.append(h)
        layer_in = jnp.stack(outs, axis=1)
        hs.append(h)
        cs.append(c)
    out = jnp.dot(layer_in[:, -1, :], params["fc_w"].T,
                  precision=hp) + params["fc_b"]
    return out, (jnp.stack(hs), jnp.stack(cs))


# ----------------------------------------------------------------------------
# Deterministic parameter init (shapes follow SentimentRNN.__init__)
# ----------------------------------------------------------------------------
def init_params(key, vocab_size, output_size, embedding_dim, hidden_dim,
                n_layers):
    keys = jax.random.split(key, 3 + 4 * n_layers)
    k = iter(keys)
    scale = 1.0 / jnp.sqrt(hidden_dim)
    params = {
        "embedding": jax.random.normal(next(k), (vocab_size, embedding_dim),
                                       jnp.float32),
        "fc_w": jax.random.uniform(next(k), (output_size, hidden_dim),
                                   jnp.float32, -scale, scale),
        "fc_b": jax.random.uniform(next(k), (output_size,),
                                   jnp.float32, -scale, scale),
    }
    for layer in range(n_layers):
        in_dim = embedding_dim if layer == 0 else hidden_dim
        params[f"w_ih_l{layer}"] = jax.random.uniform(
            next(k), (4 * hidden_dim, in_dim), jnp.float32, -scale, scale)
        params[f"w_hh_l{layer}"] = jax.random.uniform(
            next(k), (4 * hidden_dim, hidden_dim), jnp.float32, -scale, scale)
        params[f"b_ih_l{layer}"] = jax.random.uniform(
            next(k), (4 * hidden_dim,), jnp.float32, -scale, scale)
        params[f"b_hh_l{layer}"] = jax.random.uniform(
            next(k), (4 * hidden_dim,), jnp.float32, -scale, scale)
    return params


if __name__ == "__main__":
    vocab_size = 50
    output_size = 3
    embedding_dim = 32
    hidden_dim = 32
    n_layers = 2
    batch = 2

    root = jax.random.PRNGKey(0)
    k_params, k_tok1, k_tok2 = jax.random.split(root, 3)

    params = init_params(k_params, vocab_size, output_size, embedding_dim,
                         hidden_dim, n_layers)

    h0 = jnp.zeros((n_layers, batch, hidden_dim), jnp.float32)
    c0 = jnp.zeros((n_layers, batch, hidden_dim), jnp.float32)

    # --- Test 1: T=8, time_tile=4 -> 2 time tiles (cross-tile state carry),
    #     f32 matmul path, tight-ish tolerance (1e-2 allows for possible
    #     reduced-precision MXU passes under default dot precision).
    x1 = jax.random.randint(k_tok1, (batch, 8), 0, vocab_size, dtype=jnp.int32)
    out1, (hn1, cn1) = sentiment_rnn_forward(
        params, x1, (h0, c0), time_tile=4, matmul_dtype=jnp.float32)
    jax.block_until_ready((out1, hn1, cn1))
    assert out1.shape == (batch, output_size), out1.shape
    assert hn1.shape == (n_layers, batch, hidden_dim)
    assert cn1.shape == (n_layers, batch, hidden_dim)
    ref1, (rh1, rc1) = _reference_forward(params, x1, (h0, c0))
    assert jnp.allclose(out1, ref1, rtol=1e-2, atol=1e-2)
    assert jnp.allclose(hn1, rh1, rtol=1e-2, atol=1e-2)
    assert jnp.allclose(cn1, rc1, rtol=1e-2, atol=1e-2)

    # --- Test 2: prime T=7 exercises T padding + masked state updates,
    #     default bf16 matmul path (MXU-native), looser tolerance.
    x2 = jax.random.randint(k_tok2, (batch, 7), 0, vocab_size, dtype=jnp.int32)
    out2, (hn2, cn2) = sentiment_rnn_forward(params, x2, (h0, c0))
    jax.block_until_ready((out2, hn2, cn2))
    assert out2.shape == (batch, output_size), out2.shape
    ref2, (rh2, rc2) = _reference_forward(params, x2, (h0, c0))
    assert jnp.allclose(out2, ref2, rtol=3e-2, atol=3e-2)
    assert jnp.allclose(hn2, rh2, rtol=3e-2, atol=3e-2)
    assert jnp.allclose(cn2, rc2, rtol=3e-2, atol=3e-2)

    print("KERNEL_OK")
</pallas_src>

<mosaic_0001>
module attributes {stable_mosaic.version = 11 : i64} {
  func.func @_fused_lstm_fc_kernel(%arg0: i32, %arg1: i32, %arg2: memref<4x8x32xf32, #tpu.memory_space<vmem>>, %arg3: memref<32x128xf32, #tpu.memory_space<vmem>>, %arg4: memref<1x128xf32, #tpu.memory_space<vmem>>, %arg5: memref<2x32x128xf32, #tpu.memory_space<vmem>>, %arg6: memref<1x32x128xf32, #tpu.memory_space<vmem>>, %arg7: memref<1x1x128xf32, #tpu.memory_space<vmem>>, %arg8: memref<2x8x32xf32, #tpu.memory_space<vmem>>, %arg9: memref<2x8x32xf32, #tpu.memory_space<vmem>>, %arg10: memref<32x128xf32, #tpu.memory_space<vmem>>, %arg11: memref<1x128xf32, #tpu.memory_space<vmem>>, %arg12: memref<2x8x32xf32, #tpu.memory_space<vmem>>, %arg13: memref<2x8x32xf32, #tpu.memory_space<vmem>>, %arg14: memref<8x128xf32, #tpu.memory_space<vmem>>, %arg15: memref<2x8x32xf32, #tpu.memory_space<vmem>>, %arg16: memref<2x8x32xf32, #tpu.memory_space<vmem>>, %arg17: memref<32x128xf32, #tpu.memory_space<vmem>>) attributes {dimension_semantics = [#tpu.dimension_semantics<parallel>, #tpu.dimension_semantics<arbitrary>], iteration_bounds = array<i64: 1, 2>, scalar_prefetch = 0 : i64, scratch_operands = 3 : i64, tpu.core_type = #tpu.core_type<tc>, window_params = [{transform_indices = @transform_0, window_bounds = array<i64: 4, 8, 32>}, {pipeline_mode = #tpu.pipeline_mode<synchronous>, transform_indices = @transform_1, window_bounds = array<i64: 32, 128>}, {pipeline_mode = #tpu.pipeline_mode<synchronous>, transform_indices = @transform_2, window_bounds = array<i64: 1, 128>}, {pipeline_mode = #tpu.pipeline_mode<synchronous>, transform_indices = @transform_3, window_bounds = array<i64: 2, 32, 128>}, {pipeline_mode = #tpu.pipeline_mode<synchronous>, transform_indices = @transform_4, window_bounds = array<i64: 1, 32, 128>}, {pipeline_mode = #tpu.pipeline_mode<synchronous>, transform_indices = @transform_5, window_bounds = array<i64: 1, 1, 128>}, {transform_indices = @transform_6, window_bounds = array<i64: 2, 8, 32>}, {transform_indices = @transform_7, window_bounds = array<i64: 2, 8, 32>}, {pipeline_mode = #tpu.pipeline_mode<synchronous>, transform_indices = @transform_8, window_bounds = array<i64: 32, 128>}, {pipeline_mode = #tpu.pipeline_mode<synchronous>, transform_indices = @transform_9, window_bounds = array<i64: 1, 128>}, {transform_indices = @transform_10, window_bounds = array<i64: 2, 8, 32>}, {transform_indices = @transform_11, window_bounds = array<i64: 2, 8, 32>}, {transform_indices = @transform_12, window_bounds = array<i64: 8, 128>}]} {
    %c0_i32 = arith.constant 0 : i32
    %0 = arith.cmpi eq, %arg1, %c0_i32 : i32
    %1 = arith.extui %0 : i1 to i32
    %c0_i32_0 = arith.constant 0 : i32
    %2 = arith.cmpi ne, %1, %c0_i32_0 : i32
    scf.if %2 {
      %c0_74 = arith.constant 0 : index
      %c0_75 = arith.constant 0 : index
      %c0_76 = arith.constant 0 : index
      %206 = vector.load %arg8[%c0_74, %c0_75, %c0_76] : memref<2x8x32xf32, #tpu.memory_space<vmem>>, vector<2x8x32xf32>
      %c0_77 = arith.constant 0 : index
      %c0_78 = arith.constant 0 : index
      %c0_79 = arith.constant 0 : index
      %207 = vector.load %arg15[%c0_77, %c0_78, %c0_79] : memref<2x8x32xf32, #tpu.memory_space<vmem>>, vector<2x8x32xf32>
      tpu.vector_store %arg15[%c0_77, %c0_78, %c0_79], %206 {strides = array<i32>} : memref<2x8x32xf32, #tpu.memory_space<vmem>>, vector<2x8x32xf32>,
      %c0_80 = arith.constant 0 : index
      %c0_81 = arith.constant 0 : index
      %c0_82 = arith.constant 0 : index
      %208 = vector.load %arg9[%c0_80, %c0_81, %c0_82] : memref<2x8x32xf32, #tpu.memory_space<vmem>>, vector<2x8x32xf32>
      %c0_83 = arith.constant 0 : index
      %c0_84 = arith.constant 0 : index
      %c0_85 = arith.constant 0 : index
      %209 = vector.load %arg16[%c0_83, %c0_84, %c0_85] : memref<2x8x32xf32, #tpu.memory_space<vmem>>, vector<2x8x32xf32>
      tpu.vector_store %arg16[%c0_83, %c0_84, %c0_85], %208 {strides = array<i32>} : memref<2x8x32xf32, #tpu.memory_space<vmem>>, vector<2x8x32xf32>,
    } else {
    }
    %c0 = arith.constant 0 : index
    %c0_1 = arith.constant 0 : index
    %c0_2 = arith.constant 0 : index
    %3 = vector.load %arg2[%c0, %c0_1, %c0_2] : memref<4x8x32xf32, #tpu.memory_space<vmem>>, vector<4x8x32xf32>
    %4 = vector.shape_cast %3 : vector<4x8x32xf32> to vector<32x32xf32>
    %c0_3 = arith.constant 0 : index
    %c0_4 = arith.constant 0 : index
    %5 = vector.load %arg3[%c0_3, %c0_4] : memref<32x128xf32, #tpu.memory_space<vmem>>, vector<32x128xf32>
    %cst = arith.constant dense<0.000000e+00> : vector<32x128xf32>
    %6 = tpu.matmul %4, %5, %cst {dimension_numbers = #tpu.dot_dimension_numbers<[1], [0], [0], [1], [0, 0, 1, 1], [], []>} : vector<32x32xf32>, vector<32x128xf32>, vector<32x128xf32> -> vector<32x128xf32>
    %c0_5 = arith.constant 0 : index
    %c0_6 = arith.constant 0 : index
    %7 = vector.load %arg4[%c0_5, %c0_6] : memref<1x128xf32, #tpu.memory_space<vmem>>, vector<1x128xf32>
    %8 = vector.broadcast %7 : vector<1x128xf32> to vector<32x128xf32>
    %9 = arith.addf %6, %8 : vector<32x128xf32>
    %c0_7 = arith.constant 0 : index
    %c0_8 = arith.constant 0 : index
    %10 = vector.load %arg17[%c0_7, %c0_8] : memref<32x128xf32, #tpu.memory_space<vmem>>, vector<32x128xf32>
    tpu.vector_store %arg17[%c0_7, %c0_8], %9 {strides = array<i32>} : memref<32x128xf32, #tpu.memory_space<vmem>>, vector<32x128xf32>,
    %c0_9 = arith.constant 0 : index
    %c0_10 = arith.constant 0 : index
    %c0_11 = arith.constant 0 : index
    %11 = vector.load %arg5[%c0_9, %c0_10, %c0_11] : memref<2x32x128xf32, #tpu.memory_space<vmem>>, vector<1x32x128xf32>
    %12 = vector.shape_cast %11 : vector<1x32x128xf32> to vector<32x128xf32>
    %c1 = arith.constant 1 : index
    %c0_12 = arith.constant 0 : index
    %c0_13 = arith.constant 0 : index
    %13 = vector.load %arg5[%c1, %c0_12, %c0_13] : memref<2x32x128xf32, #tpu.memory_space<vmem>>, vector<1x32x128xf32>
    %14 = vector.shape_cast %13 : vector<1x32x128xf32> to vector<32x128xf32>
    %c0_14 = arith.constant 0 : index
    %c0_15 = arith.constant 0 : index
    %c0_16 = arith.constant 0 : index
    %15 = vector.load %arg6[%c0_14, %c0_15, %c0_16] : memref<1x32x128xf32, #tpu.memory_space<vmem>>, vector<1x32x128xf32>
    %16 = vector.shape_cast %15 : vector<1x32x128xf32> to vector<32x128xf32>
    %c0_17 = arith.constant 0 : index
    %c0_18 = arith.constant 0 : index
    %c0_19 = arith.constant 0 : index
    %17 = vector.load %arg7[%c0_17, %c0_18, %c0_19] : memref<1x1x128xf32, #tpu.memory_space<vmem>>, vector<1x1x128xf32>
    %18 = vector.shape_cast %17 : vector<1x1x128xf32> to vector<1x128xf32>
    %c0_20 = arith.constant 0 : index
    %c0_21 = arith.constant 0 : index
    %c0_22 = arith.constant 0 : index
    %19 = vector.load %arg15[%c0_20, %c0_21, %c0_22] : memref<2x8x32xf32, #tpu.memory_space<vmem>>, vector<1x8x32xf32>
    %20 = vector.shape_cast %19 : vector<1x8x32xf32> to vector<8x32xf32>
    %c1_23 = arith.constant 1 : index
    %c0_24 = arith.constant 0 : index
    %c0_25 = arith.constant 0 : index
    %21 = vector.load %arg15[%c1_23, %c0_24, %c0_25] : memref<2x8x32xf32, #tpu.memory_space<vmem>>, vector<1x8x32xf32>
    %22 = vector.shape_cast %21 : vector<1x8x32xf32> to vector<8x32xf32>
    %c0_26 = arith.constant 0 : index
    %c0_27 = arith.constant 0 : index
    %c0_28 = arith.constant 0 : index
    %23 = vector.load %arg16[%c0_26, %c0_27, %c0_28] : memref<2x8x32xf32, #tpu.memory_space<vmem>>, vector<1x8x32xf32>
    %24 = vector.shape_cast %23 : vector<1x8x32xf32> to vector<8x32xf32>
    %c1_29 = arith.constant 1 : index
    %c0_30 = arith.constant 0 : index
    %c0_31 = arith.constant 0 : index
    %25 = vector.load %arg16[%c1_29, %c0_30, %c0_31] : memref<2x8x32xf32, #tpu.memory_space<vmem>>, vector<1x8x32xf32>
    %26 = vector.shape_cast %25 : vector<1x8x32xf32> to vector<8x32xf32>
    %c0_i32_32 = arith.constant 0 : i32
    %c8_i32 = arith.constant 8 : i32
    %27 = arith.muli %c0_i32_32, %c8_i32 : i32
    %28 = tpu.assume_multiple %27, 8 : i32
    %29 = arith.index_cast %28 : i32 to index
    %c0_33 = arith.constant 0 : index
    %30 = vector.load %arg17[%29, %c0_33] : memref<32x128xf32, #tpu.memory_space<vmem>>, vector<8x128xf32>
    %cst_34 = arith.constant dense<0.000000e+00> : vector<8x128xf32>
    %31 = tpu.matmul %20, %12, %cst_34 {dimension_numbers = #tpu.dot_dimension_numbers<[1], [0], [0], [1], [0, 0, 1, 1], [], []>} : vector<8x32xf32>, vector<32x128xf32>, vector<8x128xf32> -> vector<8x128xf32>
    %32 = arith.addf %30, %31 : vector<8x128xf32>
    %33 = arith.negf %32 : vector<8x128xf32>
    %34 = math.exp %33 : vector<8x128xf32>
    %cst_35 = arith.constant 1.000000e+00 : f32
    %35 = vector.broadcast %cst_35 : f32 to vector<8x128xf32>
    %36 = arith.addf %35, %34 : vector<8x128xf32>
    %37 = arith.divf %35, %36 : vector<8x128xf32>
    %38 = math.tanh %32 : vector<8x128xf32>
    %39 = vector.extract_strided_slice %37 {offsets = [0, 0], sizes = [8, 32], strides = [1, 1]} : vector<8x128xf32> to vector<8x32xf32>
    %40 = vector.extract_strided_slice %37 {offsets = [0, 32], sizes = [8, 32], strides = [1, 1]} : vector<8x128xf32> to vector<8x32xf32>
    %41 = vector.extract_strided_slice %37 {offsets = [0, 96], sizes = [8, 32], strides = [1, 1]} : vector<8x128xf32> to vector<8x32xf32>
    %42 = vector.extract_strided_slice %38 {offsets = [0, 64], sizes = [8, 32], strides = [1, 1]} : vector<8x128xf32> to vector<8x32xf32>
    %43 = arith.mulf %40, %24 : vector<8x32xf32>
    %44 = arith.mulf %39, %42 : vector<8x32xf32>
    %45 = arith.addf %43, %44 : vector<8x32xf32>
    %46 = math.tanh %45 : vector<8x32xf32>
    %47 = arith.mulf %41, %46 : vector<8x32xf32>
    %cst_36 = arith.constant dense<0.000000e+00> : vector<8x128xf32>
    %48 = tpu.matmul %47, %16, %cst_36 {dimension_numbers = #tpu.dot_dimension_numbers<[1], [0], [0], [1], [0, 0, 1, 1], [], []>} : vector<8x32xf32>, vector<32x128xf32>, vector<8x128xf32> -> vector<8x128xf32>
    %49 = vector.broadcast %18 : vector<1x128xf32> to vector<8x128xf32>
    %50 = arith.addf %48, %49 : vector<8x128xf32>
    %cst_37 = arith.constant dense<0.000000e+00> : vector<8x128xf32>
    %51 = tpu.matmul %22, %14, %cst_37 {dimension_numbers = #tpu.dot_dimension_numbers<[1], [0], [0], [1], [0, 0, 1, 1], [], []>} : vector<8x32xf32>, vector<32x128xf32>, vector<8x128xf32> -> vector<8x128xf32>
    %52 = arith.addf %50, %51 : vector<8x128xf32>
    %53 = arith.negf %52 : vector<8x128xf32>
    %54 = math.exp %53 : vector<8x128xf32>
    %cst_38 = arith.constant 1.000000e+00 : f32
    %55 = vector.broadcast %cst_38 : f32 to vector<8x128xf32>
    %56 = arith.addf %55, %54 : vector<8x128xf32>
    %57 = arith.divf %55, %56 : vector<8x128xf32>
    %58 = math.tanh %52 : vector<8x128xf32>
    %59 = vector.extract_strided_slice %57 {offsets = [0, 0], sizes = [8, 32], strides = [1, 1]} : vector<8x128xf32> to vector<8x32xf32>
    %60 = vector.extract_strided_slice %57 {offsets = [0, 32], sizes = [8, 32], strides = [1, 1]} : vector<8x128xf32> to vector<8x32xf32>
    %61 = vector.extract_strided_slice %57 {offsets = [0, 96], sizes = [8, 32], strides = [1, 1]} : vector<8x128xf32> to vector<8x32xf32>
    %62 = vector.extract_strided_slice %58 {offsets = [0, 64], sizes = [8, 32], strides = [1, 1]} : vector<8x128xf32> to vector<8x32xf32>
    %63 = arith.mulf %60, %26 : vector<8x32xf32>
    %64 = arith.mulf %59, %62 : vector<8x32xf32>
    %65 = arith.addf %63, %64 : vector<8x32xf32>
    %66 = math.tanh %65 : vector<8x32xf32>
    %67 = arith.mulf %61, %66 : vector<8x32xf32>
    %c1_i32 = arith.constant 1 : i32
    %c8_i32_39 = arith.constant 8 : i32
    %68 = arith.muli %c1_i32, %c8_i32_39 : i32
    %69 = tpu.assume_multiple %68, 8 : i32
    %70 = arith.index_cast %69 : i32 to index
    %c0_40 = arith.constant 0 : index
    %71 = vector.load %arg17[%70, %c0_40] : memref<32x128xf32, #tpu.memory_space<vmem>>, vector<8x128xf32>
    %cst_41 = arith.constant dense<0.000000e+00> : vector<8x128xf32>
    %72 = tpu.matmul %47, %12, %cst_41 {dimension_numbers = #tpu.dot_dimension_numbers<[1], [0], [0], [1], [0, 0, 1, 1], [], []>} : vector<8x32xf32>, vector<32x128xf32>, vector<8x128xf32> -> vector<8x128xf32>
    %73 = arith.addf %71, %72 : vector<8x128xf32>
    %74 = arith.negf %73 : vector<8x128xf32>
    %75 = math.exp %74 : vector<8x128xf32>
    %cst_42 = arith.constant 1.000000e+00 : f32
    %76 = vector.broadcast %cst_42 : f32 to vector<8x128xf32>
    %77 = arith.addf %76, %75 : vector<8x128xf32>
    %78 = arith.divf %76, %77 : vector<8x128xf32>
    %79 = math.tanh %73 : vector<8x128xf32>
    %80 = vector.extract_strided_slice %78 {offsets = [0, 0], sizes = [8, 32], strides = [1, 1]} : vector<8x128xf32> to vector<8x32xf32>
    %81 = vector.extract_strided_slice %78 {offsets = [0, 32], sizes = [8, 32], strides = [1, 1]} : vector<8x128xf32> to vector<8x32xf32>
    %82 = vector.extract_strided_slice %78 {offsets = [0, 96], sizes = [8, 32], strides = [1, 1]} : vector<8x128xf32> to vector<8x32xf32>
    %83 = vector.extract_strided_slice %79 {offsets = [0, 64], sizes = [8, 32], strides = [1, 1]} : vector<8x128xf32> to vector<8x32xf32>
    %84 = arith.mulf %81, %45 : vector<8x32xf32>
    %85 = arith.mulf %80, %83 : vector<8x32xf32>
    %86 = arith.addf %84, %85 : vector<8x32xf32>
    %87 = math.tanh %86 : vector<8x32xf32>
    %88 = arith.mulf %82, %87 : vector<8x32xf32>
    %cst_43 = arith.constant dense<0.000000e+00> : vector<8x128xf32>
    %89 = tpu.matmul %88, %16, %cst_43 {dimension_numbers = #tpu.dot_dimension_numbers<[1], [0], [0], [1], [0, 0, 1, 1], [], []>} : vector<8x32xf32>, vector<32x128xf32>, vector<8x128xf32> -> vector<8x128xf32>
    %90 = vector.broadcast %18 : vector<1x128xf32> to vector<8x128xf32>
    %91 = arith.addf %89, %90 : vector<8x128xf32>
    %cst_44 = arith.constant dense<0.000000e+00> : vector<8x128xf32>
    %92 = tpu.matmul %67, %14, %cst_44 {dimension_numbers = #tpu.dot_dimension_numbers<[1], [0], [0], [1], [0, 0, 1, 1], [], []>} : vector<8x32xf32>, vector<32x128xf32>, vector<8x128xf32> -> vector<8x128xf32>
    %93 = arith.addf %91, %92 : vector<8x128xf32>
    %94 = arith.negf %93 : vector<8x128xf32>
    %95 = math.exp %94 : vector<8x128xf32>
    %cst_45 = arith.constant 1.000000e+00 : f32
    %96 = vector.broadcast %cst_45 : f32 to vector<8x128xf32>
    %97 = arith.addf %96, %95 : vector<8x128xf32>
    %98 = arith.divf %96, %97 : vector<8x128xf32>
    %99 = math.tanh %93 : vector<8x128xf32>
    %100 = vector.extract_strided_slice %98 {offsets = [0, 0], sizes = [8, 32], strides = [1, 1]} : vector<8x128xf32> to vector<8x32xf32>
    %101 = vector.extract_strided_slice %98 {offsets = [0, 32], sizes = [8, 32], strides = [1, 1]} : vector<8x128xf32> to vector<8x32xf32>
    %102 = vector.extract_strided_slice %98 {offsets = [0, 96], sizes = [8, 32], strides = [1, 1]} : vector<8x128xf32> to vector<8x32xf32>
    %103 = vector.extract_strided_slice %99 {offsets = [0, 64], sizes = [8, 32], strides = [1, 1]} : vector<8x128xf32> to vector<8x32xf32>
    %104 = arith.mulf %101, %65 : vector<8x32xf32>
    %105 = arith.mulf %100, %103 : vector<8x32xf32>
    %106 = arith.addf %104, %105 : vector<8x32xf32>
    %107 = math.tanh %106 : vector<8x32xf32>
    %108 = arith.mulf %102, %107 : vector<8x32xf32>
    %c2_i32 = arith.constant 2 : i32
    %c8_i32_46 = arith.constant 8 : i32
    %109 = arith.muli %c2_i32, %c8_i32_46 : i32
    %110 = tpu.assume_multiple %109, 8 : i32
    %111 = arith.index_cast %110 : i32 to index
    %c0_47 = arith.constant 0 : index
    %112 = vector.load %arg17[%111, %c0_47] : memref<32x128xf32, #tpu.memory_space<vmem>>, vector<8x128xf32>
    %cst_48 = arith.constant dense<0.000000e+00> : vector<8x128xf32>
    %113 = tpu.matmul %88, %12, %cst_48 {dimension_numbers = #tpu.dot_dimension_numbers<[1], [0], [0], [1], [0, 0, 1, 1], [], []>} : vector<8x32xf32>, vector<32x128xf32>, vector<8x128xf32> -> vector<8x128xf32>
    %114 = arith.addf %112, %113 : vector<8x128xf32>
    %115 = arith.negf %114 : vector<8x128xf32>
    %116 = math.exp %115 : vector<8x128xf32>
    %cst_49 = arith.constant 1.000000e+00 : f32
    %117 = vector.broadcast %cst_49 : f32 to vector<8x128xf32>
    %118 = arith.addf %117, %116 : vector<8x128xf32>
    %119 = arith.divf %117, %118 : vector<8x128xf32>
    %120 = math.tanh %114 : vector<8x128xf32>
    %121 = vector.extract_strided_slice %119 {offsets = [0, 0], sizes = [8, 32], strides = [1, 1]} : vector<8x128xf32> to vector<8x32xf32>
    %122 = vector.extract_strided_slice %119 {offsets = [0, 32], sizes = [8, 32], strides = [1, 1]} : vector<8x128xf32> to vector<8x32xf32>
    %123 = vector.extract_strided_slice %119 {offsets = [0, 96], sizes = [8, 32], strides = [1, 1]} : vector<8x128xf32> to vector<8x32xf32>
    %124 = vector.extract_strided_slice %120 {offsets = [0, 64], sizes = [8, 32], strides = [1, 1]} : vector<8x128xf32> to vector<8x32xf32>
    %125 = arith.mulf %122, %86 : vector<8x32xf32>
    %126 = arith.mulf %121, %124 : vector<8x32xf32>
    %127 = arith.addf %125, %126 : vector<8x32xf32>
    %128 = math.tanh %127 : vector<8x32xf32>
    %129 = arith.mulf %123, %128 : vector<8x32xf32>
    %cst_50 = arith.constant dense<0.000000e+00> : vector<8x128xf32>
    %130 = tpu.matmul %129, %16, %cst_50 {dimension_numbers = #tpu.dot_dimension_numbers<[1], [0], [0], [1], [0, 0, 1, 1], [], []>} : vector<8x32xf32>, vector<32x128xf32>, vector<8x128xf32> -> vector<8x128xf32>
    %131 = vector.broadcast %18 : vector<1x128xf32> to vector<8x128xf32>
    %132 = arith.addf %130, %131 : vector<8x128xf32>
    %cst_51 = arith.constant dense<0.000000e+00> : vector<8x128xf32>
    %133 = tpu.matmul %108, %14, %cst_51 {dimension_numbers = #tpu.dot_dimension_numbers<[1], [0], [0], [1], [0, 0, 1, 1], [], []>} : vector<8x32xf32>, vector<32x128xf32>, vector<8x128xf32> -> vector<8x128xf32>
    %134 = arith.addf %132, %133 : vector<8x128xf32>
    %135 = arith.negf %134 : vector<8x128xf32>
    %136 = math.exp %135 : vector<8x128xf32>
    %cst_52 = arith.constant 1.000000e+00 : f32
    %137 = vector.broadcast %cst_52 : f32 to vector<8x128xf32>
    %138 = arith.addf %137, %136 : vector<8x128xf32>
    %139 = arith.divf %137, %138 : vector<8x128xf32>
    %140 = math.tanh %134 : vector<8x128xf32>
    %141 = vector.extract_strided_slice %139 {offsets = [0, 0], sizes = [8, 32], strides = [1, 1]} : vector<8x128xf32> to vector<8x32xf32>
    %142 = vector.extract_strided_slice %139 {offsets = [0, 32], sizes = [8, 32], strides = [1, 1]} : vector<8x128xf32> to vector<8x32xf32>
    %143 = vector.extract_strided_slice %139 {offsets = [0, 96], sizes = [8, 32], strides = [1, 1]} : vector<8x128xf32> to vector<8x32xf32>
    %144 = vector.extract_strided_slice %140 {offsets = [0, 64], sizes = [8, 32], strides = [1, 1]} : vector<8x128xf32> to vector<8x32xf32>
    %145 = arith.mulf %142, %106 : vector<8x32xf32>
    %146 = arith.mulf %141, %144 : vector<8x32xf32>
    %147 = arith.addf %145, %146 : vector<8x32xf32>
    %148 = math.tanh %147 : vector<8x32xf32>
    %149 = arith.mulf %143, %148 : vector<8x32xf32>
    %c3_i32 = arith.constant 3 : i32
    %c8_i32_53 = arith.constant 8 : i32
    %150 = arith.muli %c3_i32, %c8_i32_53 : i32
    %151 = tpu.assume_multiple %150, 8 : i32
    %152 = arith.index_cast %151 : i32 to index
    %c0_54 = arith.constant 0 : index
    %153 = vector.load %arg17[%152, %c0_54] : memref<32x128xf32, #tpu.memory_space<vmem>>, vector<8x128xf32>
    %cst_55 = arith.constant dense<0.000000e+00> : vector<8x128xf32>
    %154 = tpu.matmul %129, %12, %cst_55 {dimension_numbers = #tpu.dot_dimension_numbers<[1], [0], [0], [1], [0, 0, 1, 1], [], []>} : vector<8x32xf32>, vector<32x128xf32>, vector<8x128xf32> -> vector<8x128xf32>
    %155 = arith.addf %153, %154 : vector<8x128xf32>
    %156 = arith.negf %155 : vector<8x128xf32>
    %157 = math.exp %156 : vector<8x128xf32>
    %cst_56 = arith.constant 1.000000e+00 : f32
    %158 = vector.broadcast %cst_56 : f32 to vector<8x128xf32>
    %159 = arith.addf %158, %157 : vector<8x128xf32>
    %160 = arith.divf %158, %159 : vector<8x128xf32>
    %161 = math.tanh %155 : vector<8x128xf32>
    %162 = vector.extract_strided_slice %160 {offsets = [0, 0], sizes = [8, 32], strides = [1, 1]} : vector<8x128xf32> to vector<8x32xf32>
    %163 = vector.extract_strided_slice %160 {offsets = [0, 32], sizes = [8, 32], strides = [1, 1]} : vector<8x128xf32> to vector<8x32xf32>
    %164 = vector.extract_strided_slice %160 {offsets = [0, 96], sizes = [8, 32], strides = [1, 1]} : vector<8x128xf32> to vector<8x32xf32>
    %165 = vector.extract_strided_slice %161 {offsets = [0, 64], sizes = [8, 32], strides = [1, 1]} : vector<8x128xf32> to vector<8x32xf32>
    %166 = arith.mulf %163, %127 : vector<8x32xf32>
    %167 = arith.mulf %162, %165 : vector<8x32xf32>
    %168 = arith.addf %166, %167 : vector<8x32xf32>
    %169 = math.tanh %168 : vector<8x32xf32>
    %170 = arith.mulf %164, %169 : vector<8x32xf32>
    %cst_57 = arith.constant dense<0.000000e+00> : vector<8x128xf32>
    %171 = tpu.matmul %170, %16, %cst_57 {dimension_numbers = #tpu.dot_dimension_numbers<[1], [0], [0], [1], [0, 0, 1, 1], [], []>} : vector<8x32xf32>, vector<32x128xf32>, vector<8x128xf32> -> vector<8x128xf32>
    %172 = vector.broadcast %18 : vector<1x128xf32> to vector<8x128xf32>
    %173 = arith.addf %171, %172 : vector<8x128xf32>
    %cst_58 = arith.constant dense<0.000000e+00> : vector<8x128xf32>
    %174 = tpu.matmul %149, %14, %cst_58 {dimension_numbers = #tpu.dot_dimension_numbers<[1], [0], [0], [1], [0, 0, 1, 1], [], []>} : vector<8x32xf32>, vector<32x128xf32>, vector<8x128xf32> -> vector<8x128xf32>
    %175 = arith.addf %173, %174 : vector<8x128xf32>
    %176 = arith.negf %175 : vector<8x128xf32>
    %177 = math.exp %176 : vector<8x128xf32>
    %cst_59 = arith.constant 1.000000e+00 : f32
    %178 = vector.broadcast %cst_59 : f32 to vector<8x128xf32>
    %179 = arith.addf %178, %177 : vector<8x128xf32>
    %180 = arith.divf %178, %179 : vector<8x128xf32>
    %181 = math.tanh %175 : vector<8x128xf32>
    %182 = vector.extract_strided_slice %180 {offsets = [0, 0], sizes = [8, 32], strides = [1, 1]} : vector<8x128xf32> to vector<8x32xf32>
    %183 = vector.extract_strided_slice %180 {offsets = [0, 32], sizes = [8, 32], strides = [1, 1]} : vector<8x128xf32> to vector<8x32xf32>
    %184 = vector.extract_strided_slice %180 {offsets = [0, 96], sizes = [8, 32], strides = [1, 1]} : vector<8x128xf32> to vector<8x32xf32>
    %185 = vector.extract_strided_slice %181 {offsets = [0, 64], sizes = [8, 32], strides = [1, 1]} : vector<8x128xf32> to vector<8x32xf32>
    %186 = arith.mulf %183, %147 : vector<8x32xf32>
    %187 = arith.mulf %182, %185 : vector<8x32xf32>
    %188 = arith.addf %186, %187 : vector<8x32xf32>
    %189 = math.tanh %188 : vector<8x32xf32>
    %190 = arith.mulf %184, %189 : vector<8x32xf32>
    %c4_i32 = arith.constant 4 : i32
    %c0_60 = arith.constant 0 : index
    %c0_61 = arith.constant 0 : index
    %c0_62 = arith.constant 0 : index
    %191 = vector.load %arg15[%c0_60, %c0_61, %c0_62] : memref<2x8x32xf32, #tpu.memory_space<vmem>>, vector<1x8x32xf32>
    %192 = vector.shape_cast %191 : vector<1x8x32xf32> to vector<8x32xf32>
    %193 = vector.shape_cast %170 : vector<8x32xf32> to vector<1x8x32xf32>
    tpu.vector_store %arg15[%c0_60, %c0_61, %c0_62], %193 {strides = array<i32>} : memref<2x8x32xf32, #tpu.memory_space<vmem>>, vector<1x8x32xf32>,
    %c0_63 = arith.constant 0 : index
    %c0_64 = arith.constant 0 : index
    %c0_65 = arith.constant 0 : index
    %194 = vector.load %arg16[%c0_63, %c0_64, %c0_65] : memref<2x8x32xf32, #tpu.memory_space<vmem>>, vector<1x8x32xf32>
    %195 = vector.shape_cast %194 : vector<1x8x32xf32> to vector<8x32xf32>
    %196 = vector.shape_cast %168 : vector<8x32xf32> to vector<1x8x32xf32>
    tpu.vector_store %arg16[%c0_63, %c0_64, %c0_65], %196 {strides = array<i32>} : memref<2x8x32xf32, #tpu.memory_space<vmem>>, vector<1x8x32xf32>,
    %c1_66 = arith.constant 1 : index
    %c0_67 = arith.constant 0 : index
    %c0_68 = arith.constant 0 : index
    %197 = vector.load %arg15[%c1_66, %c0_67, %c0_68] : memref<2x8x32xf32, #tpu.memory_space<vmem>>, vector<1x8x32xf32>
    %198 = vector.shape_cast %197 : vector<1x8x32xf32> to vector<8x32xf32>
    %199 = vector.shape_cast %190 : vector<8x32xf32> to vector<1x8x32xf32>
    tpu.vector_store %arg15[%c1_66, %c0_67, %c0_68], %199 {strides = array<i32>} : memref<2x8x32xf32, #tpu.memory_space<vmem>>, vector<1x8x32xf32>,
    %c1_69 = arith.constant 1 : index
    %c0_70 = arith.constant 0 : index
    %c0_71 = arith.constant 0 : index
    %200 = vector.load %arg16[%c1_69, %c0_70, %c0_71] : memref<2x8x32xf32, #tpu.memory_space<vmem>>, vector<1x8x32xf32>
    %201 = vector.shape_cast %200 : vector<1x8x32xf32> to vector<8x32xf32>
    %202 = vector.shape_cast %188 : vector<8x32xf32> to vector<1x8x32xf32>
    tpu.vector_store %arg16[%c1_69, %c0_70, %c0_71], %202 {strides = array<i32>} : memref<2x8x32xf32, #tpu.memory_space<vmem>>, vector<1x8x32xf32>,
    %c1_i32_72 = arith.constant 1 : i32
    %203 = arith.cmpi eq, %arg1, %c1_i32_72 : i32
    %204 = arith.extui %203 : i1 to i32
    %c0_i32_73 = arith.constant 0 : i32
    %205 = arith.cmpi ne, %204, %c0_i32_73 : i32
    scf.if %205 {
      %c0_74 = arith.constant 0 : index
      %c0_75 = arith.constant 0 : index
      %c0_76 = arith.constant 0 : index
      %206 = vector.load %arg12[%c0_74, %c0_75, %c0_76] : memref<2x8x32xf32, #tpu.memory_space<vmem>>, vector<1x8x32xf32>
      %207 = vector.shape_cast %206 : vector<1x8x32xf32> to vector<8x32xf32>
      %208 = vector.shape_cast %170 : vector<8x32xf32> to vector<1x8x32xf32>
      tpu.vector_store %arg12[%c0_74, %c0_75, %c0_76], %208 {strides = array<i32>} : memref<2x8x32xf32, #tpu.memory_space<vmem>>, vector<1x8x32xf32>,
      %c0_77 = arith.constant 0 : index
      %c0_78 = arith.constant 0 : index
      %c0_79 = arith.constant 0 : index
      %209 = vector.load %arg13[%c0_77, %c0_78, %c0_79] : memref<2x8x32xf32, #tpu.memory_space<vmem>>, vector<1x8x32xf32>
      %210 = vector.shape_cast %209 : vector<1x8x32xf32> to vector<8x32xf32>
      %211 = vector.shape_cast %168 : vector<8x32xf32> to vector<1x8x32xf32>
      tpu.vector_store %arg13[%c0_77, %c0_78, %c0_79], %211 {strides = array<i32>} : memref<2x8x32xf32, #tpu.memory_space<vmem>>, vector<1x8x32xf32>,
      %c1_80 = arith.constant 1 : index
      %c0_81 = arith.constant 0 : index
      %c0_82 = arith.constant 0 : index
      %212 = vector.load %arg12[%c1_80, %c0_81, %c0_82] : memref<2x8x32xf32, #tpu.memory_space<vmem>>, vector<1x8x32xf32>
      %213 = vector.shape_cast %212 : vector<1x8x32xf32> to vector<8x32xf32>
      %214 = vector.shape_cast %190 : vector<8x32xf32> to vector<1x8x32xf32>
      tpu.vector_store %arg12[%c1_80, %c0_81, %c0_82], %214 {strides = array<i32>} : memref<2x8x32xf32, #tpu.memory_space<vmem>>, vector<1x8x32xf32>,
      %c1_83 = arith.constant 1 : index
      %c0_84 = arith.constant 0 : index
      %c0_85 = arith.constant 0 : index
      %215 = vector.load %arg13[%c1_83, %c0_84, %c0_85] : memref<2x8x32xf32, #tpu.memory_space<vmem>>, vector<1x8x32xf32>
      %216 = vector.shape_cast %215 : vector<1x8x32xf32> to vector<8x32xf32>
      %217 = vector.shape_cast %188 : vector<8x32xf32> to vector<1x8x32xf32>
      tpu.vector_store %arg13[%c1_83, %c0_84, %c0_85], %217 {strides = array<i32>} : memref<2x8x32xf32, #tpu.memory_space<vmem>>, vector<1x8x32xf32>,
      %c0_86 = arith.constant 0 : index
      %c0_87 = arith.constant 0 : index
      %218 = vector.load %arg10[%c0_86, %c0_87] : memref<32x128xf32, #tpu.memory_space<vmem>>, vector<32x128xf32>
      %cst_88 = arith.constant dense<0.000000e+00> : vector<8x128xf32>
      %219 = tpu.matmul %190, %218, %cst_88 {dimension_numbers = #tpu.dot_dimension_numbers<[1], [0], [0], [1], [0, 0, 1, 1], [], []>} : vector<8x32xf32>, vector<32x128xf32>, vector<8x128xf32> -> vector<8x128xf32>
      %c0_89 = arith.constant 0 : index
      %c0_90 = arith.constant 0 : index
      %220 = vector.load %arg11[%c0_89, %c0_90] : memref<1x128xf32, #tpu.memory_space<vmem>>, vector<1x128xf32>
      %221 = vector.broadcast %220 : vector<1x128xf32> to vector<8x128xf32>
      %222 = arith.addf %219, %221 : vector<8x128xf32>
      %c0_91 = arith.constant 0 : index
      %c0_92 = arith.constant 0 : index
      %223 = vector.load %arg14[%c0_91, %c0_92] : memref<8x128xf32, #tpu.memory_space<vmem>>, vector<8x128xf32>
      tpu.vector_store %arg14[%c0_91, %c0_92], %222 {strides = array<i32>} : memref<8x128xf32, #tpu.memory_space<vmem>>, vector<8x128xf32>,
    } else {
    }
    return
  }
  func.func @transform_0(%arg0: i32, %arg1: i32) -> (i32, i32, i32) {
    %c0_i32 = arith.constant 0 : i32
    %c0_i32_0 = arith.constant 0 : i32
    return %arg1, %arg0, %c0_i32 : i32, i32, i32
  }
  func.func @transform_1(%arg0: i32, %arg1: i32) -> (i32, i32) {
    %c0_i32 = arith.constant 0 : i32
    %c0_i32_0 = arith.constant 0 : i32
    %c0_i32_1 = arith.constant 0 : i32
    return %c0_i32, %c0_i32_0 : i32, i32
  }
  func.func @transform_2(%arg0: i32, %arg1: i32) -> (i32, i32) {
    %c0_i32 = arith.constant 0 : i32
    %c0_i32_0 = arith.constant 0 : i32
    %c0_i32_1 = arith.constant 0 : i32
    return %c0_i32, %c0_i32_0 : i32, i32
  }
  func.func @transform_3(%arg0: i32, %arg1: i32) -> (i32, i32, i32) {
    %c0_i32 = arith.constant 0 : i32
    %c0_i32_0 = arith.constant 0 : i32
    %c0_i32_1 = arith.constant 0 : i32
    %c0_i32_2 = arith.constant 0 : i32
    return %c0_i32, %c0_i32_0, %c0_i32_1 : i32, i32, i32
  }
  func.func @transform_4(%arg0: i32, %arg1: i32) -> (i32, i32, i32) {
    %c0_i32 = arith.constant 0 : i32
    %c0_i32_0 = arith.constant 0 : i32
    %c0_i32_1 = arith.constant 0 : i32
    %c0_i32_2 = arith.constant 0 : i32
    return %c0_i32, %c0_i32_0, %c0_i32_1 : i32, i32, i32
  }
  func.func @transform_5(%arg0: i32, %arg1: i32) -> (i32, i32, i32) {
    %c0_i32 = arith.constant 0 : i32
    %c0_i32_0 = arith.constant 0 : i32
    %c0_i32_1 = arith.constant 0 : i32
    %c0_i32_2 = arith.constant 0 : i32
    return %c0_i32, %c0_i32_0, %c0_i32_1 : i32, i32, i32
  }
  func.func @transform_6(%arg0: i32, %arg1: i32) -> (i32, i32, i32) {
    %c0_i32 = arith.constant 0 : i32
    %c0_i32_0 = arith.constant 0 : i32
    %c0_i32_1 = arith.constant 0 : i32
    return %c0_i32, %arg0, %c0_i32_0 : i32, i32, i32
  }
  func.func @transform_7(%arg0: i32, %arg1: i32) -> (i32, i32, i32) {
    %c0_i32 = arith.constant 0 : i32
    %c0_i32_0 = arith.constant 0 : i32
    %c0_i32_1 = arith.constant 0 : i32
    return %c0_i32, %arg0, %c0_i32_0 : i32, i32, i32
  }
  func.func @transform_8(%arg0: i32, %arg1: i32) -> (i32, i32) {
    %c0_i32 = arith.constant 0 : i32
    %c0_i32_0 = arith.constant 0 : i32
    %c0_i32_1 = arith.constant 0 : i32
    return %c0_i32, %c0_i32_0 : i32, i32
  }
  func.func @transform_9(%arg0: i32, %arg1: i32) -> (i32, i32) {
    %c0_i32 = arith.constant 0 : i32
    %c0_i32_0 = arith.constant 0 : i32
    %c0_i32_1 = arith.constant 0 : i32
    return %c0_i32, %c0_i32_0 : i32, i32
  }
  func.func @transform_10(%arg0: i32, %arg1: i32) -> (i32, i32, i32) {
    %c0_i32 = arith.constant 0 : i32
    %c0_i32_0 = arith.constant 0 : i32
    %c0_i32_1 = arith.constant 0 : i32
    return %c0_i32, %arg0, %c0_i32_0 : i32, i32, i32
  }
  func.func @transform_11(%arg0: i32, %arg1: i32) -> (i32, i32, i32) {
    %c0_i32 = arith.constant 0 : i32
    %c0_i32_0 = arith.constant 0 : i32
    %c0_i32_1 = arith.constant 0 : i32
    return %c0_i32, %arg0, %c0_i32_0 : i32, i32, i32
  }
  func.func @transform_12(%arg0: i32, %arg1: i32) -> (i32, i32) {
    %c0_i32 = arith.constant 0 : i32
    %c0_i32_0 = arith.constant 0 : i32
    return %arg0, %c0_i32 : i32, i32
  }
}

</mosaic_0001>

<bundles_post_ra>
// kernel: tpu_custom_call.1
= control target key start
LH: loop header
LB: loop body
LE: loop exit
PB: predicated region body
PF: predicated region fallthrough
CT: control target
= control target key end

     0   :  { %s2604_s0 = inlined_call_operand.hbm [shape: f32[8,8,32], index: 0, kind: input, shape index: {}]   ;;  %s2605_s1 = inlined_call_operand.hbm [shape: f32[32,128], index: 1, kind: input, shape index: {}]   ;;  %s2606_s2 = inlined_call_operand.vmem [shape: f32[1,128], index: 2, kind: input, shape index: {}]   ;;  %s2607_s3 = inlined_call_operand.hbm [shape: f32[2,32,128], index: 3, kind: input, shape index: {}]   ;;  %s2608_s4 = inlined_call_operand.hbm [shape: f32[1,32,128], index: 4, kind: input, shape index: {}]   ;;  %s2609_s5 = inlined_call_operand.vmem [shape: f32[1,1,128], index: 5, kind: input, shape index: {}]   ;;  %s2610_s6 = inlined_call_operand.hbm [shape: f32[2,8,32], index: 6, kind: input, shape index: {}]   ;;  %s2611_s7 = inlined_call_operand.hbm [shape: f32[2,8,32], index: 7, kind: input, shape index: {}]   ;;  %s2612_s8 = inlined_call_operand.hbm [shape: f32[32,128], index: 8, kind: input, shape index: {}]   ;;  %s2613_s9 = inlined_call_operand.vmem [shape: f32[1,128], index: 9, kind: input, shape index: {}]   ;;  %s2614_s10 = inlined_call_operand.hbm [shape: f32[2,8,32], index: 10, kind: output, shape index: {0}]   ;;  %s2615_s11 = inlined_call_operand.hbm [shape: f32[2,8,32], index: 11, kind: output, shape index: {1}]   ;;  %s2616_s12 = inlined_call_operand.hbm [shape: f32[8,128], index: 12, kind: output, shape index: {2}]  }
   0x1   :  { %2620 = sst [smem:[#allocation27_spill]] %s2605_s1 }
   0x2   :  { %2621 = sst [smem:[#allocation28_spill]] %s2607_s3 }
   0x3   :  { %2622 = sst [smem:[#allocation29_spill]] %s2608_s4 }
   0x4   :  { %2623 = sst [smem:[#allocation30_spill]] %s2610_s6 }
   0x5   :  { %2624 = sst [smem:[#allocation31_spill]] %s2614_s10 }
   0x6   :  { %2625 = sst [smem:[#allocation32_spill]] %s2615_s11 }
   0x7   :  { %2626 = sst [smem:[#allocation33_spill]] %s2616_s12 }
   0x8   :  { %18 = vsyncpa [#allocation6], 0 }
   0x9   :  { %20 = vsyncpa [#allocation6 + $0x1], 0 }
   0xa   :  { %21 = vsyncpa [#allocation9], 0 }
   0xb   :  { %22 = vsyncpa [#allocation12], 0 }
   0xc   :  { %23 = vsyncpa [#allocation15], 0 }
   0xd   :  { %24 = vsyncpa [#allocation7], 0 }
   0xe   :  { %25 = vsyncpa [#allocation19], 0  ;;  %s2222_s21 = smov 0   ;;  %s2224_s22 = smov 0  }
   0xf   :  { %s2226_s23 = smov 0   ;;  %s2228_s24 = smov 0  }
  0x10   :  { %s2230_s25 = smov 0   ;;  %s2232_s26 = smov 0  }
  0x11 LB: > { %s2617_s27 = sadd.s32 4294967295, %s2139_s26   ;;  %p1509_p0 = scmp.ge.s32.totalorder %s2139_s26, 1  ;;  %s2139_s26 = sphi %s2232_s26, %s31_s26   ;;  %s2135_s25 = sphi %s2230_s25, %s2647_s25   ;;  %s2131_s24 = sphi %s2228_s24, %s2646_s24   ;;  %s2127_s23 = sphi %s2226_s23, %s2645_s23   ;;  %s2123_s22 = sphi %s2224_s22, %s2644_s22   ;;  %s2119_s21 = sphi %s2222_s21, %s2643_s21  }
  0x12   : > { %p2256_p1 = scmp.eq.s32.totalorder %s2617_s27, 0  ;;  %p353_p2 = scmp.lt.s32.totalorder %s2139_s26, 3 }
  0x13   : > { %s2628_s1 = sld [smem:[#allocation27_spill]]  ;;  %s2141_s15 = smov [#allocation8]  }
  0x14   : > { %p2264_p3 = pnand %p1509_p0, %p353_p2  ;;  %s366_s16 = sshll.u32 %s2141_s15, 4  ;;  %s367_s16 = int_to_ptr.vmem [resolvable:$true] %s366_s16 }
  0x15   : > { %s2631_s4 = sld [smem:[#allocation29_spill]]  ;;  %s2618_s29 = smov 128  }
  0x16   : > { %p1602_p4 = pneg %p2264_p3  ;;  %s2619_s30 = smov 8  }
  0x17   : > { %s2144_s15 = smov [#allocation11]   ;;  %s430_s10 = sshll.u32 %s2611_s7, 4  ;;  %s431_s10 = int_to_ptr.hbm [resolvable:$true] %s430_s10 }
  0x18   : > { %p2272_p5 = pnand %p1602_p4, %p2256_p1  ;;  %s397_s27 = sshll.u32 %s2144_s15, 4  ;;  %s398_s27 = int_to_ptr.vmem [resolvable:$true] %s397_s27 }
  0x19   : > { %s364_s13 = sshll.u32 %s2628_s1, 4  ;;  %s2632_s3 = sld [smem:[#allocation28_spill]]  ;;  %s365_s13 = int_to_ptr.hbm [resolvable:$true] %s364_s13 }
  0x1a   : > { %1605 = dma.hbm_to_vmem [thread:$0]  (!%p2272_p5), %s365_s13, 512, %s367_s16, [#allocation9], %s2618_s29, %s2618_s29, %s2619_s30  }
  0x1b   : > { %s395_s20 = sshll.u32 %s2631_s4, 4  ;;  %s2145_s11 = smov [#allocation14]   ;;  %s396_s20 = int_to_ptr.hbm [resolvable:$true] %s395_s20 }
  0x1c   : > { %1611 = dma.hbm_to_vmem [thread:$0]  (!%p2272_p5), %s396_s20, 512, %s398_s27, [#allocation12], %s2618_s29, %s2618_s29, %s2619_s30  }
  0x1d   : > { %s432_s13 = sshll.u32 %s2145_s11, 4  ;;  %s2146_s1 = smov [#allocation10]   ;;  %s433_s13 = int_to_ptr.vmem [resolvable:$true] %s432_s13 }
  0x1e   : > { %1617 = dma.hbm_to_vmem [thread:$0]  (!%p2272_p5), %s431_s10, 256, %s433_s13, [#allocation15], %s2618_s29, %s2618_s29, %s2619_s30  }
  0x1f   : > { %s381_s4 = sshll.u32 %s2632_s3, 4  ;;  %s383_s12 = sshll.u32 %s2146_s1, 4  ;;  %s382_s4 = int_to_ptr.hbm [resolvable:$true] %s381_s4  ;;  %s384_s12 = int_to_ptr.vmem [resolvable:$true] %s383_s12 }
  0x20   : > { %s2633_s6 = sld [smem:[#allocation30_spill]]  ;;  %s444_s15 = sshll.u32 %s2612_s8, 4  ;;  %s445_s15 = int_to_ptr.hbm [resolvable:$true] %s444_s15 }
  0x21   : > { %1608 = dma.hbm_to_vmem [thread:$0]  (!%p2272_p5), %s382_s4, 1024, %s384_s12, [#allocation9], %s2618_s29, %s2618_s29, %s2619_s30  }
  0x22   : > { %s2147_s18 = smov [#allocation13]   ;;  %s2148_s13 = smov [#allocation16]  }
  0x23   : > { %s416_s19 = sshll.u32 %s2147_s18, 4  ;;  %s446_s4 = sshll.u32 %s2148_s13, 4  ;;  %s417_s19 = int_to_ptr.vmem [resolvable:$true] %s416_s19  ;;  %s447_s4 = int_to_ptr.vmem [resolvable:$true] %s446_s4 }
  0x24   : > { %1620 = dma.hbm_to_vmem [thread:$0]  (!%p2272_p5), %s445_s15, 512, %s447_s4, [#allocation15], %s2618_s29, %s2618_s29, %s2619_s30  }
  0x25   : > { %s40_s1 = sadd.s32 1, %s2135_s25  ;;  %s52_s12 = sadd.s32 1, %s2127_s23 }
  0x26   : > { %s414_s20 = sshll.u32 %s2633_s6, 4  ;;  %p41_p6 = scmp.ge.s32.totalorder %s40_s1, 2  ;;  %s415_s20 = int_to_ptr.hbm [resolvable:$true] %s414_s20 }
  0x27   : > { %1614 = dma.hbm_to_vmem [thread:$0]  (!%p2272_p5), %s415_s20, 256, %s417_s19, [#allocation12], %s2618_s29, %s2618_s29, %s2619_s30  }
  0x28   : > { %p59_p7 = scmp.ne.s32.totalorder %s2127_s23, %s2123_s22  ;;  %p60_p8 = scmp.eq.s32.totalorder %s2139_s26, 0 }
  0x29   : > { %p65_p9 = scmp.ne.s32.totalorder %s2123_s22, %s2119_s21  ;;  %s2649_s1 = smov (%p41_p6, %s40_s1), 0 }
  0x2a   : > { %p2330_p10 = por %p60_p8, %p59_p7  ;;  %s47_s27 = ssub.s32 %s2135_s25, %s2649_s1 }
  0x2b   : > { %p2336_p11 = por %p2256_p1, %p65_p9  ;;  %p1631_p12 = scmp.lt.s32.totalorder %s2139_s26, 2 }
  0x2c   : > { %p50_p13 = scmp.eq.s32.totalorder %s47_s27, 0  ;;  %s463_s20 = sand.u32 1, %s2127_s23  }
  0x2d   : > { %s1517_s10 = sshll.u32 %s463_s20, 5  ;;  %s1563_s21 = sshll.u32 %s2135_s25, 5 }
  0x2e   : > { %s2345_s11 = scalar_select %p50_p13, %s2127_s23, %s52_s12  }
  0x2f   : > { %s473_s19 = scalar_lea.hbm %s2604_s0, %s1563_s21  ;;  %s467_s13 = scalar_lea.vmem [#allocation5], %s1517_s10 }
  0x30   : > { %s476_s4 = sshll.u32 %s467_s13, 4  ;;  %s474_s29 = sshll.u32 %s473_s19, 4  ;;  %s477_s4 = int_to_ptr.vmem [resolvable:$true] %s476_s4  ;;  %s475_s29 = int_to_ptr.hbm [resolvable:$true] %s474_s29 }
  0x31   : > { %p1622_p0 = pnand %p1631_p12, %p2330_p10  ;;  %s464_s30 = scalar_lea.sflag [#allocation6], %s463_s20 }
  0x32   : > { %s2636_s3 = smov 8   ;;  %s2637_s6 = smov 128  }
  0x33   : > { %1624 = dma.hbm_to_vmem [thread:$0]  (!%p1622_p0), %s475_s29, 512, %s477_s4, %s464_s30, %s2637_s6, %s2637_s6, %s2636_s3  }
  0x34   : > { %488 = sbr.rel (%p2264_p3) target bundleno = 3164 (0xc5c), region = 60  ;;  %s490_s12 = sand.u32 (!%p2264_p3), 1, %s2123_s22  }
  0x35   : > { %s1521_s27 = sshll.u32 (!%p2264_p3), %s490_s12, 5  ;;  %s491_s21 = scalar_lea.sflag (!%p2264_p3), [#allocation6], %s490_s12 }
  0x36   : > { %s2359_s10 = scalar_lea.vmem (!%p2264_p3), [#allocation5], %s1521_s27 }
  0x39   : > { %2094 = dma.done.wait (%p2336_p11), %s491_s21, 512  }
  0x3a   : > { %2096 = vsyncadd (%p2336_p11), %s491_s21, 4294966784 }
  0x3b   : > { %2098 = dma.done.wait (%p2256_p1), [#allocation9], 1536  }
  0x3c   : > { %2100 = vsyncadd (%p2256_p1), [#allocation9], 4294965760 }
  0x3d   : > { %2102 = dma.done.wait (%p2256_p1), [#allocation12], 768  }
  0x3e   : > { %2104 = vsyncadd (%p2256_p1), [#allocation12], 4294966528 }
  0x3f   : > { %2106 = dma.done.wait (%p2256_p1), [#allocation15], 768  }
  0x40   : > { %2108 = vsyncadd (%p2256_p1), [#allocation15], 4294966528  ;;  %p1528_p2 = scmp.ne.s32.totalorder %s2131_s24, 0 }
  0x42   : > { %565 = sbr.rel (%p1528_p2) target bundleno = 76 (0x4c), region = 92 }
  0x47   : > { %v566_v0 = vld [vmem:[#allocation13] sm:$0xff]  ;;  %vm568_vm0 = vcmask 261120   ;;  %v567_v1 = vld [vmem:[#allocation13 + $0x8] sm:$0xff]  ;;  %v571_v2 = vld [vmem:[#allocation14] sm:$0xff] }
  0x48   : > { %569 = vst.msk [vmem:[#allocation2] sm:$0xff] %vm568_vm0, %v566_v0  ;;  %v572_v3 = vld [vmem:[#allocation14 + $0x8] sm:$0xff] }
  0x49   : > { %570 = vst.msk [vmem:[#allocation2 + $0x8] sm:$0xff] %vm568_vm0, %v567_v1 }
  0x4a   : > { %573 = vst.msk [vmem:[#allocation3] sm:$0xff] %vm568_vm0, %v571_v2 }
  0x4b   : > { %574 = vst.msk [vmem:[#allocation3 + $0x8] sm:$0xff] %vm568_vm0, %v572_v3 }
  0x4c PF: > { %v582_v4 = vld [vmem:[#allocation8 + $0x18] sm:$0xff]  ;;  %v581_v5 = vld [vmem:[#allocation8 + $0x10] sm:$0xff]  ;;  %v580_v8 = vld [vmem:[#allocation8 + $0x8] sm:$0xff]  ;;  %vm587_vm1 = vcmask 261120   ;;  %s2149_s28 = smov 64   ;;  %s2150_s14 = smov 32  }
  0x4d   : > { %v2378_v6 = vld [vmem:[#allocation10 + $0x18] sm:$0xff]  ;;  %612 = vmatpush.msra.mxu0 %v582_v4  ;;  %v2381_v7 = vld [vmem:[#allocation10 + $0x10] sm:$0xff]  ;;  %v2383_v9 = vld [vmem:[#allocation10 + $0x8] sm:$0xff]  ;;  %s2151_s16 = smov 96   ;;  %p1553_p1 = scmp.ne.s32.totalorder %s2131_s24, 1 }
  0x4e   : > { %669 = vmatpush.msra.mxu1 %v2378_v6  ;;  %v579_v10 = vld [vmem:[#allocation8] sm:$0xff]  ;;  %v2414_v41 = vld [vmem:[#allocation11 + $0x18] sm:$0xff]  ;;  %v2416_v42 = vld [vmem:[#allocation11 + $0x10] sm:$0xff] }
  0x4f   : > { %613 = vmatpush.msra.mxu0 %v581_v5  ;;  %v2386_v11 = vld [vmem:[#allocation10] sm:$0xff]  ;;  %v2418_v43 = vld [vmem:[#allocation10 + $0x38] sm:$0xff]  ;;  %739 = vmatpush.msra.mxu2 %v2414_v41  ;;  %v2422_v44 = vld [vmem:[#allocation10 + $0x30] sm:$0xff] }
  0x50   : > { %670 = vmatpush.msra.mxu1 %v2381_v7  ;;  %v575_v12 = vld [vmem:[%s2359_s10] sm:$0xff]  ;;  %762 = vmatpush.msra.mxu3 %v2418_v43  ;;  %v576_v45 = vld [vmem:[%s2359_s10 + $0x8] sm:$0xff] }
  0x51   : > { %614 = vmatpush.msra.mxu0 %v580_v8  ;;  %v647_v13 = vld [vmem:[#allocation2] sm:$0xff]  ;;  %v650_v20 = vld [vmem:[#allocation3] sm:$0xff]  ;;  %v2425_v46 = vld [vmem:[#allocation11 + $0x8] sm:$0xff]  ;;  %740 = vmatpush.msra.mxu2 %v2416_v42 }
  0x52   : > { %671 = vmatpush.msra.mxu1 %v2383_v9  ;;  %v2404_v14 = vld [vmem:[%s2606_s2] ss:$0 sm:$0xff]  ;;  %v2428_v47 = vld [vmem:[#allocation10 + $0x28] sm:$0xff]  ;;  %763 = vmatpush.msra.mxu3 %v2422_v44  ;;  %v652_v53 = vld [vmem:[#allocation3 + $0x8] sm:$0xff] }
  0x53   : > { %615 = vmatpush.msra.mxu0 %v579_v10  ;;  %v2432_v48 = vld [vmem:[#allocation11] sm:$0xff]  ;;  %741 = vmatpush.msra.mxu2 %v2425_v46  ;;  %v649_v52 = vld [vmem:[#allocation2 + $0x8] sm:$0xff] }
  0x54   : > { %672 = vmatpush.msra.mxu1 %v2386_v11  ;;  %1529 = vmatmul.msk.f32.vlgmr.msra.gmra.mxu0 %vm587_vm1, %v575_v12  ;;  %v2442_v51 = vld [vmem:[#allocation10 + $0x20] sm:$0xff] }
  0x55   : > { %1533 = vmatmul.msk.f32.vlgmr.msra.gmra.mxu1 %vm587_vm1, %v647_v13  ;;  %764 = vmatpush.msra.mxu3 %v2428_v47  ;;  %v2469_v59 = vld [vmem:[%s2609_s5] ss:$0 sm:$0xff] }
  0x56   : > { %826 = vmatpush.msrb.mxu1 %v2378_v6  ;;  %742 = vmatpush.msra.mxu2 %v2432_v48 }
  0x57   : > { %765 = vmatpush.msra.mxu3 %v2442_v51 }
  0x58   : > { %827 = vmatpush.msrb.mxu1 %v2381_v7  ;;  %889 = vmatpush.msrb.mxu2 %v2414_v41 }
  0x59   : > { %1536 = vmatmul.msk.f32.vlgmr.msra.gmra.mxu3 %vm587_vm1, %v649_v52  ;;  %v577_v52 = vld [vmem:[%s2359_s10 + $0x10] sm:$0xff] }
  0x5a   : > { %828 = vmatpush.msrb.mxu1 %v2383_v9  ;;  %890 = vmatpush.msrb.mxu2 %v2416_v42 }
  0x5b   : > { %914 = vmatpush.msrb.mxu3 %v2418_v43 }
  0x5c   : > { %829 = vmatpush.msrb.mxu1 %v2386_v11  ;;  %1530 = vmatmul.msk.f32.gmra.mxu0 %vm587_vm1, %v576_v45 }
  0x5d   : > { %891 = vmatpush.msrb.mxu2 %v2425_v46  ;;  %915 = vmatpush.msrb.mxu3 %v2422_v44 }
  0x5e   : > { %974 = vmatpush.msra.mxu1 %v2378_v6 }
  0x5f   : > { %892 = vmatpush.msrb.mxu2 %v2432_v48  ;;  %916 = vmatpush.msrb.mxu3 %v2428_v47 }
  0x60   : > { %975 = vmatpush.msra.mxu1 %v2381_v7 }
  0x61   : > { %917 = vmatpush.msrb.mxu3 %v2442_v51 }
  0x62   : > { %976 = vmatpush.msra.mxu1 %v2383_v9 }
  0x63   : > { %1062 = vmatpush.msra.mxu3 %v2418_v43 }
  0x64   : > { %977 = vmatpush.msra.mxu1 %v2386_v11  ;;  %1531 = vmatmul.msk.f32.gmra.mxu0 %vm587_vm1, %v577_v52 }
  0x65   : > { %1063 = vmatpush.msra.mxu3 %v2422_v44 }
  0x67   : > { %1064 = vmatpush.msra.mxu3 %v2428_v47 }
  0x69   : > { %1065 = vmatpush.msra.mxu3 %v2442_v51 }
  0xd1   : > { %v617_v15 = vpop.f32.mrf.mxu0 }
  0xd2   : > { %v674_v16 = vpop.f32.mrf.mxu1  ;;  %v618_v17 = vadd.f32 %v2404_v14, %v617_v15 }
  0xd4   : > { %v677_v18 = vadd.f32 %v674_v16, %v618_v17 }
  0xd6   : > { %1710 = vtanh.f32 %v677_v18  ;;  %v1534_v21 = vmul.f32 -1.442695, %v677_v18 }
  0xd8   : > { %1712 = vpow2.f32 %v1534_v21 }
  0xd9   : > { %v620_v55 = vpop.f32.mrf.mxu0 }
  0xda   : > { %v621_v56 = vadd.f32 %v2404_v14, %v620_v55 }
  0xdc   : > { %v1711_v19 = vpop.eup %1710  ;;  %v767_v61 = vpop.f32.mrf.mxu3 }
  0xdd   : > { %704 = vrot.lane.b32.xlu0 %v1711_v19, %s2149_s28 }
  0xde   : > { %v1713_v22 = vpop.eup %1712 }
  0xdf   : > { %v681_v23 = vadd.f32 1.0, %v1713_v22 }
  0xe1   : > { %1714 = vrcp.f32 %v681_v23  ;;  %v693_v29 = vand.u32 2147483648, %v681_v23  ;;  %vm687_vm3 = vweird.f32 %v681_v23  ;;  %v691_v30 = vand.u32 2147483647, %v681_v23 }
  0xe3   : > { %v694_v32 = vor.u32 1.1754944e-38, %v693_v29  ;;  %vm692_vm5 = vcmp.eq.f32.partialorder %v691_v30, 8.507059e+37 }
  0xe5   : > { %699 = vrot.lane.b32.xlu0 %v650_v20, %s2150_s14 }
  0xe7   : > { %v1715_v24 = vpop.eup %1714 }
  0xe8   : > { %v683_v25 = vmul.f32 %v1715_v24, %v681_v23  ;;  %vm688_vm2 = vweird.f32 %v1715_v24 }
  0xe9   : > { %vm689_vm4 = vmor %vm687_vm3, %vm688_vm2 }
  0xea   : > { %v684_v26 = vsub.f32 1.0, %v683_v25 }
  0xec   : > { %v685_v27 = vmul.f32 %v1715_v24, %v684_v26 }
  0xee   : > { %v686_v28 = vadd.f32 %v1715_v24, %v685_v27 }
  0xf0   : > { %v690_v31 = vsel %vm689_vm4, %v1715_v24, %v686_v28 }
  0xf1   : > { %v695_v34 = vsel %vm692_vm5, %v694_v32, %v690_v31 }
 0x14f   : > { %v705_v33 = vpop.permute.xlu0 %704 }
 0x150   : > { %v707_v35 = vmul.f32 %v705_v33, %v695_v34 }
 0x152   : > { %709 = vrot.lane.b32.xlu1 %v707_v35, %s2150_s14 }
 0x157   : > { %v700_v36 = vpop.permute.xlu0 %699 }
 0x158   : > { %v702_v37 = vmul.f32 %v700_v36, %v695_v34 }
 0x1c4   : > { %v710_v38 = vpop.permute.xlu1 %709 }
 0x1c5   : > { %v2410_v39 = vadd.f32 %v710_v38, %v702_v37 }
 0x1c7   : > { %1716 = vtanh.f32 %v2410_v39 }
 0x1cd   : > { %v1717_v40 = vpop.eup %1716 }
 0x1ce   : > { %715 = vrot.lane.b32.xlu1 %v1717_v40, %s2149_s28 }
 0x1d6   : > { %792 = vrot.lane.b32.xlu1 %v652_v53, %s2150_s14 }
 0x240   : > { %v716_v49 = vpop.permute.xlu1 %715 }
 0x241   : > { %v718_v50 = vmul.f32 %v716_v49, %v695_v34 }
 0x243   : > { %723 = vrot.lane.b32.xlu2 %v718_v50, %s2150_s14 }
 0x248   : > { %v793_v37 = vpop.permute.xlu1 %792 }
 0x29d   : > { %v724_v54 = vpop.permute.xlu2 %723 }
 0x29e   : > { %1535 = vmatmul.msk.f32.vlgmr.msra.gmra.mxu2 %vm587_vm1, %v724_v54  ;;  %1538 = vmatmul.msk.f32.vlgmr.msrb.gmra.mxu1 %vm587_vm1, %v724_v54 }
 0x29f   : > { %1037 = vmatpush.msra.mxu2 %v2414_v41  ;;  %1122 = vmatpush.msrb.mxu1 %v2378_v6 }
 0x2a1   : > { %1038 = vmatpush.msra.mxu2 %v2416_v42  ;;  %1123 = vmatpush.msrb.mxu1 %v2381_v7 }
 0x2a3   : > { %1039 = vmatpush.msra.mxu2 %v2425_v46  ;;  %1124 = vmatpush.msrb.mxu1 %v2383_v9 }
 0x2a5   : > { %1040 = vmatpush.msra.mxu2 %v2432_v48  ;;  %1125 = vmatpush.msrb.mxu1 %v2386_v11 }
 0x31b   : > { %v831_v57 = vpop.f32.mrf.mxu1 }
 0x31c   : > { %v834_v58 = vadd.f32 %v831_v57, %v621_v56  ;;  %v623_v57 = vpop.f32.mrf.mxu0 }
 0x31e   : > { %1718 = vtanh.f32 %v834_v58  ;;  %v1539_v2 = vmul.f32 -1.442695, %v834_v58 }
 0x321   : > { %v744_v60 = vpop.f32.mrf.mxu2 }
 0x322   : > { %v745_v62 = vadd.f32 %v2469_v59, %v744_v60 }
 0x324   : > { %v1719_v63 = vpop.eup %1718  ;;  %v770_v0 = vadd.f32 %v767_v61, %v745_v62 }
 0x325   : > { %857 = vrot.lane.b32.xlu2 %v1719_v63, %s2149_s28 }
 0x326   : > { %1720 = vtanh.f32 %v770_v0  ;;  %v1537_v8 = vmul.f32 -1.442695, %v770_v0 }
 0x327   : > { %1722 = vpow2.f32 %v1539_v2 }
 0x32c   : > { %v1721_v1 = vpop.eup %1720 }
 0x32d   : > { %797 = vrot.lane.b32.xlu0 %v1721_v1, %s2149_s28  ;;  %v1723_v3 = vpop.eup %1722 }
 0x32e   : > { %v838_v4 = vadd.f32 1.0, %v1723_v3 }
 0x330   : > { %1724 = vrcp.f32 %v838_v4  ;;  %v850_v11 = vand.u32 2147483648, %v838_v4  ;;  %vm844_vm7 = vweird.f32 %v838_v4  ;;  %v848_v12 = vand.u32 2147483647, %v838_v4 }
 0x331   : > { %1726 = vpow2.f32 %v1537_v8 }
 0x332   : > { %v851_v16 = vor.u32 1.1754944e-38, %v850_v11  ;;  %vm849_vm9 = vcmp.eq.f32.partialorder %v848_v12, 8.507059e+37 }
 0x336   : > { %v1725_v5 = vpop.eup %1724 }
 0x337   : > { %v840_v6 = vmul.f32 %v1725_v5, %v838_v4  ;;  %vm845_vm6 = vweird.f32 %v1725_v5  ;;  %v1727_v13 = vpop.eup %1726 }
 0x338   : > { %vm846_vm8 = vmor %vm844_vm7, %vm845_vm6  ;;  %v774_v17 = vadd.f32 1.0, %v1727_v13 }
 0x339   : > { %v841_v7 = vsub.f32 1.0, %v840_v6 }
 0x33a   : > { %1728 = vrcp.f32 %v774_v17  ;;  %v786_v26 = vand.u32 2147483648, %v774_v17  ;;  %vm780_vm11 = vweird.f32 %v774_v17  ;;  %v784_v27 = vand.u32 2147483647, %v774_v17 }
 0x33b   : > { %v842_v9 = vmul.f32 %v1725_v5, %v841_v7 }
 0x33c   : > { %v787_v29 = vor.u32 1.1754944e-38, %v786_v26  ;;  %vm785_vm13 = vcmp.eq.f32.partialorder %v784_v27, 8.507059e+37 }
 0x33d   : > { %v843_v10 = vadd.f32 %v1725_v5, %v842_v9 }
 0x33f   : > { %v847_v15 = vsel %vm846_vm8, %v1725_v5, %v843_v10 }
 0x340   : > { %v852_v19 = vsel %vm849_vm9, %v851_v16, %v847_v15  ;;  %v1729_v21 = vpop.eup %1728 }
 0x341   : > { %v776_v22 = vmul.f32 %v1729_v21, %v774_v17  ;;  %vm781_vm10 = vweird.f32 %v1729_v21  ;;  %v855_v33 = vmul.f32 %v852_v19, %v2410_v39 }
 0x342   : > { %vm782_vm12 = vmor %vm780_vm11, %vm781_vm10 }
 0x343   : > { %v777_v23 = vsub.f32 1.0, %v776_v22 }
 0x345   : > { %v778_v24 = vmul.f32 %v1729_v21, %v777_v23 }
 0x347   : > { %v779_v25 = vadd.f32 %v1729_v21, %v778_v24 }
 0x349   : > { %v783_v28 = vsel %vm782_vm12, %v1729_v21, %v779_v25 }
 0x34a   : > { %v788_v30 = vsel %vm785_vm13, %v787_v29, %v783_v28 }
 0x34b   : > { %v795_v38 = vmul.f32 %v793_v37, %v788_v30  ;;  %v578_v37 = vld [vmem:[%s2359_s10 + $0x18] sm:$0xff] }
 0x34c   : > { %1532 = vmatmul.msk.f32.gmra.mxu0 %vm587_vm1, %v578_v37 }
 0x37f   : > { %v858_v18 = vpop.permute.xlu2 %857 }
 0x380   : > { %v860_v20 = vmul.f32 %v858_v18, %v852_v19 }
 0x382   : > { %862 = vrot.lane.b32.xlu2 %v860_v20, %s2150_s14 }
 0x39f   : > { %v798_v31 = vpop.permute.xlu0 %797 }
 0x3a0   : > { %v800_v32 = vmul.f32 %v798_v31, %v788_v30 }
 0x3a2   : > { %802 = vrot.lane.b32.xlu0 %v800_v32, %s2150_s14 }
 0x3dc   : > { %v863_v34 = vpop.permute.xlu2 %862 }
 0x3dd   : > { %v2477_v35 = vadd.f32 %v863_v34, %v855_v33 }
 0x3df   : > { %1730 = vtanh.f32 %v2477_v35 }
 0x3e5   : > { %v1731_v36 = vpop.eup %1730 }
 0x3e6   : > { %868 = vrot.lane.b32.xlu1 %v1731_v36, %s2149_s28 }
 0x414   : > { %v803_v40 = vpop.permute.xlu0 %802 }
 0x415   : > { %v2481_v45 = vadd.f32 %v803_v40, %v795_v38 }
 0x417   : > { %1732 = vtanh.f32 %v2481_v45 }
 0x41d   : > { %v1733_v49 = vpop.eup %1732 }
 0x41e   : > { %808 = vrot.lane.b32.xlu2 %v1733_v49, %s2149_s28 }
 0x458   : > { %v869_v39 = vpop.permute.xlu1 %868 }
 0x459   : > { %v871_v50 = vmul.f32 %v869_v39, %v852_v19  ;;  %v626_v39 = vpop.f32.mrf.mxu0 }
 0x45b   : > { %873 = vrot.lane.b32.xlu0 %v871_v50, %s2150_s14  ;;  %v627_v50 = vadd.f32 %v2404_v14, %v626_v39 }
 0x478   : > { %v809_v53 = vpop.permute.xlu2 %808 }
 0x479   : > { %v811_v54 = vmul.f32 %v809_v53, %v788_v30 }
 0x47b   : > { %898 = vrot.lane.b32.xlu1 %v811_v54, %s2150_s14 }
 0x4cd   : > { %v874_v55 = vpop.permute.xlu0 %873 }
 0x4ce   : > { %1540 = vmatmul.msk.f32.vlgmr.msrb.gmra.mxu2 %vm587_vm1, %v874_v55  ;;  %1543 = vmatmul.msk.f32.vlgmr.msra.gmra.mxu1 %vm587_vm1, %v874_v55 }
 0x4cf   : > { %1185 = vmatpush.msrb.mxu2 %v2414_v41  ;;  %v624_v41 = vadd.f32 %v2404_v14, %v623_v57 }
 0x4d1   : > { %1186 = vmatpush.msrb.mxu2 %v2416_v42 }
 0x4d3   : > { %1187 = vmatpush.msrb.mxu2 %v2425_v46 }
 0x4d5   : > { %1188 = vmatpush.msrb.mxu2 %v2432_v48 }
 0x4ed   : > { %v899_v56 = vpop.permute.xlu1 %898 }
 0x4ee   : > { %1541 = vmatmul.msk.f32.vlgmr.msrb.gmra.mxu3 %vm587_vm1, %v899_v56 }
 0x4ef   : > { %1210 = vmatpush.msrb.mxu3 %v2418_v43 }
 0x4f1   : > { %1211 = vmatpush.msrb.mxu3 %v2422_v44 }
 0x4f3   : > { %1212 = vmatpush.msrb.mxu3 %v2428_v47 }
 0x4f5   : > { %1213 = vmatpush.msrb.mxu3 %v2442_v51 }
 0x54b   : > { %v979_v58 = vpop.f32.mrf.mxu1 }
 0x54c   : > { %v982_v42 = vadd.f32 %v979_v58, %v624_v41 }
 0x54e   : > { %1734 = vtanh.f32 %v982_v42  ;;  %v1544_v47 = vmul.f32 -1.442695, %v982_v42 }
 0x551   : > { %v894_v48 = vpop.f32.mrf.mxu2 }
 0x552   : > { %v895_v60 = vadd.f32 %v2469_v59, %v894_v48 }
 0x554   : > { %v1735_v46 = vpop.eup %1734 }
 0x555   : > { %1005 = vrot.lane.b32.xlu2 %v1735_v46, %s2149_s28 }
 0x571   : > { %v919_v61 = vpop.f32.mrf.mxu3 }
 0x572   : > { %v922_v43 = vadd.f32 %v919_v61, %v895_v60 }
 0x574   : > { %1736 = vtanh.f32 %v922_v43  ;;  %v1542_v11 = vmul.f32 -1.442695, %v922_v43 }
 0x575   : > { %1738 = vpow2.f32 %v1544_v47 }
 0x57a   : > { %v1737_v44 = vpop.eup %1736 }
 0x57b   : > { %945 = vrot.lane.b32.xlu0 %v1737_v44, %s2149_s28  ;;  %v1739_v51 = vpop.eup %1738 }
 0x57c   : > { %v986_v62 = vadd.f32 1.0, %v1739_v51 }
 0x57e   : > { %1740 = vrcp.f32 %v986_v62  ;;  %v998_v4 = vand.u32 2147483648, %v986_v62  ;;  %vm992_vm15 = vweird.f32 %v986_v62  ;;  %v996_v5 = vand.u32 2147483647, %v986_v62 }
 0x57f   : > { %1742 = vpow2.f32 %v1542_v11 }
 0x580   : > { %v999_v7 = vor.u32 1.1754944e-38, %v998_v4  ;;  %vm997_vm2 = vcmp.eq.f32.partialorder %v996_v5, 8.507059e+37 }
 0x584   : > { %v1741_v63 = vpop.eup %1740 }
 0x585   : > { %v988_v0 = vmul.f32 %v1741_v63, %v986_v62  ;;  %vm993_vm14 = vweird.f32 %v1741_v63  ;;  %v1743_v12 = vpop.eup %1742 }
 0x586   : > { %vm994_vm0 = vmor %vm992_vm15, %vm993_vm14  ;;  %v926_v13 = vadd.f32 1.0, %v1743_v12 }
 0x587   : > { %v989_v1 = vsub.f32 1.0, %v988_v0 }
 0x588   : > { %1744 = vrcp.f32 %v926_v13  ;;  %v938_v20 = vand.u32 2147483648, %v926_v13  ;;  %vm932_vm4 = vweird.f32 %v926_v13  ;;  %v936_v21 = vand.u32 2147483647, %v926_v13 }
 0x589   : > { %v990_v2 = vmul.f32 %v1741_v63, %v989_v1 }
 0x58a   : > { %v939_v23 = vor.u32 1.1754944e-38, %v938_v20  ;;  %vm937_vm6 = vcmp.eq.f32.partialorder %v936_v21, 8.507059e+37 }
 0x58b   : > { %v991_v3 = vadd.f32 %v1741_v63, %v990_v2 }
 0x58d   : > { %v995_v6 = vsel %vm994_vm0, %v1741_v63, %v991_v3 }
 0x58e   : > { %v1000_v9 = vsel %vm997_vm2, %v999_v7, %v995_v6  ;;  %v1745_v15 = vpop.eup %1744 }
 0x58f   : > { %v928_v16 = vmul.f32 %v1745_v15, %v926_v13  ;;  %vm933_vm3 = vweird.f32 %v1745_v15  ;;  %v1003_v27 = vmul.f32 %v1000_v9, %v2477_v35 }
 0x590   : > { %vm934_vm5 = vmor %vm932_vm4, %vm933_vm3 }
 0x591   : > { %v929_v17 = vsub.f32 1.0, %v928_v16 }
 0x593   : > { %v930_v18 = vmul.f32 %v1745_v15, %v929_v17 }
 0x595   : > { %v931_v19 = vadd.f32 %v1745_v15, %v930_v18 }
 0x597   : > { %v935_v22 = vsel %vm934_vm5, %v1745_v15, %v931_v19 }
 0x598   : > { %v940_v25 = vsel %vm937_vm6, %v939_v23, %v935_v22 }
 0x599   : > { %v943_v31 = vmul.f32 %v940_v25, %v2481_v45 }
 0x5af   : > { %v1006_v8 = vpop.permute.xlu2 %1005 }
 0x5b0   : > { %v1008_v10 = vmul.f32 %v1006_v8, %v1000_v9 }
 0x5b2   : > { %1010 = vrot.lane.b32.xlu1 %v1008_v10, %s2150_s14 }
 0x5ed   : > { %v946_v24 = vpop.permute.xlu0 %945 }
 0x5ee   : > { %v948_v26 = vmul.f32 %v946_v24, %v940_v25 }
 0x5f0   : > { %950 = vrot.lane.b32.xlu2 %v948_v26, %s2150_s14 }
 0x624   : > { %v1011_v28 = vpop.permute.xlu1 %1010 }
 0x625   : > { %v2507_v29 = vadd.f32 %v1011_v28, %v1003_v27 }
 0x627   : > { %1746 = vtanh.f32 %v2507_v29 }
 0x62d   : > { %v1747_v30 = vpop.eup %1746 }
 0x62e   : > { %1016 = vrot.lane.b32.xlu0 %v1747_v30, %s2149_s28 }
 0x64a   : > { %v951_v32 = vpop.permute.xlu2 %950 }
 0x64b   : > { %v2512_v33 = vadd.f32 %v951_v32, %v943_v31 }
 0x64d   : > { %1748 = vtanh.f32 %v2512_v33 }
 0x653   : > { %v1749_v34 = vpop.eup %1748 }
 0x654   : > { %956 = vrot.lane.b32.xlu1 %v1749_v34, %s2149_s28 }
 0x6a0   : > { %v1017_v36 = vpop.permute.xlu0 %1016 }
 0x6a1   : > { %v1019_v35 = vmul.f32 %v1017_v36, %v1000_v9 }
 0x6a3   : > { %1021 = vrot.lane.b32.xlu2 %v1019_v35, %s2150_s14 }
 0x6c6   : > { %v957_v38 = vpop.permute.xlu1 %956 }
 0x6c7   : > { %v959_v40 = vmul.f32 %v957_v38, %v940_v25 }
 0x6c9   : > { %1046 = vrot.lane.b32.xlu0 %v959_v40, %s2150_s14 }
 0x6fd   : > { %v1022_v45 = vpop.permute.xlu2 %1021 }
 0x6fe   : > { %1545 = vmatmul.msk.f32.vlgmr.msra.gmra.mxu2 %vm587_vm1, %v1022_v45  ;;  %1548 = vmatmul.msk.f32.vlgmr.msrb.gmra.mxu1 %vm587_vm1, %v1022_v45 }
 0x73b   : > { %v1047_v49 = vpop.permute.xlu0 %1046 }
 0x73c   : > { %1546 = vmatmul.msk.f32.vlgmr.msra.gmra.mxu3 %vm587_vm1, %v1047_v49 }
 0x77b   : > { %v1127_v52 = vpop.f32.mrf.mxu1 }
 0x77c   : > { %v1130_v53 = vadd.f32 %v1127_v52, %v627_v50 }
 0x77e   : > { %1750 = vtanh.f32 %v1130_v53  ;;  %v1549_v42 = vmul.f32 -1.442695, %v1130_v53 }
 0x781   : > { %v1042_v55 = vpop.f32.mrf.mxu2 }
 0x782   : > { %v1043_v56 = vadd.f32 %v2469_v59, %v1042_v55 }
 0x784   : > { %v1751_v54 = vpop.eup %1750 }
 0x785   : > { %1153 = vrot.lane.b32.xlu1 %v1751_v54, %s2149_s28 }
 0x7bf   : > { %v1067_v57 = vpop.f32.mrf.mxu3 }
 0x7c0   : > { %v1070_v41 = vadd.f32 %v1067_v57, %v1043_v56 }
 0x7c2   : > { %1752 = vtanh.f32 %v1070_v41  ;;  %v1547_v0 = vmul.f32 -1.442695, %v1070_v41 }
 0x7c3   : > { %1754 = vpow2.f32 %v1549_v42 }
 0x7c8   : > { %v1753_v58 = vpop.eup %1752 }
 0x7c9   : > { %1093 = vrot.lane.b32.xlu2 %v1753_v58, %s2149_s28  ;;  %v1755_v46 = vpop.eup %1754 }
 0x7ca   : > { %v1134_v48 = vadd.f32 1.0, %v1755_v46 }
 0x7cc   : > { %1756 = vrcp.f32 %v1134_v48  ;;  %v1146_v47 = vand.u32 2147483648, %v1134_v48  ;;  %vm1140_vm8 = vweird.f32 %v1134_v48  ;;  %v1144_v51 = vand.u32 2147483647, %v1134_v48 }
 0x7cd   : > { %1758 = vpow2.f32 %v1547_v0 }
 0x7ce   : > { %v1147_v63 = vor.u32 1.1754944e-38, %v1146_v47  ;;  %vm1145_vm10 = vcmp.eq.f32.partialorder %v1144_v51, 8.507059e+37 }
 0x7d2   : > { %v1757_v14 = vpop.eup %1756 }
 0x7d3   : > { %v1136_v60 = vmul.f32 %v1757_v14, %v1134_v48  ;;  %vm1141_vm7 = vweird.f32 %v1757_v14  ;;  %v1759_v4 = vpop.eup %1758 }
 0x7d4   : > { %vm1142_vm9 = vmor %vm1140_vm8, %vm1141_vm7  ;;  %v1074_v5 = vadd.f32 1.0, %v1759_v4 }
 0x7d5   : > { %v1137_v61 = vsub.f32 1.0, %v1136_v60 }
 0x7d6   : > { %1760 = vrcp.f32 %v1074_v5  ;;  %v1086_v11 = vand.u32 2147483648, %v1074_v5  ;;  %vm1080_vm12 = vweird.f32 %v1074_v5  ;;  %v1084_v12 = vand.u32 2147483647, %v1074_v5 }
 0x7d7   : > { %v1138_v43 = vmul.f32 %v1757_v14, %v1137_v61 }
 0x7d8   : > { %v1087_v15 = vor.u32 1.1754944e-38, %v1086_v11  ;;  %vm1085_vm14 = vcmp.eq.f32.partialorder %v1084_v12, 8.507059e+37 }
 0x7d9   : > { %v1139_v44 = vadd.f32 %v1757_v14, %v1138_v43 }
 0x7db   : > { %v1143_v62 = vsel %vm1142_vm9, %v1757_v14, %v1139_v44 }
 0x7dc   : > { %v1148_v1 = vsel %vm1145_vm10, %v1147_v63, %v1143_v62  ;;  %v1761_v6 = vpop.eup %1760 }
 0x7dd   : > { %v1076_v7 = vmul.f32 %v1761_v6, %v1074_v5  ;;  %vm1081_vm11 = vweird.f32 %v1761_v6  ;;  %v1151_v19 = vmul.f32 %v1148_v1, %v2507_v29 }
 0x7de   : > { %vm1082_vm13 = vmor %vm1080_vm12, %vm1081_vm11 }
 0x7df   : > { %v1077_v8 = vsub.f32 1.0, %v1076_v7 }
 0x7e1   : > { %v1078_v9 = vmul.f32 %v1761_v6, %v1077_v8 }
 0x7e3   : > { %v1079_v10 = vadd.f32 %v1761_v6, %v1078_v9 }
 0x7e5   : > { %v1083_v13 = vsel %vm1082_vm13, %v1761_v6, %v1079_v10 }
 0x7e6   : > { %v1088_v17 = vsel %vm1085_vm14, %v1087_v15, %v1083_v13 }
 0x7e7   : > { %v1091_v23 = vmul.f32 %v1088_v17, %v2512_v33 }
 0x7f7   : > { %v1154_v2 = vpop.permute.xlu1 %1153 }
 0x7f8   : > { %v1156_v3 = vmul.f32 %v1154_v2, %v1148_v1 }
 0x7fa   : > { %1158 = vrot.lane.b32.xlu0 %v1156_v3, %s2150_s14 }
 0x823   : > { %v1094_v16 = vpop.permute.xlu2 %1093 }
 0x824   : > { %v1096_v18 = vmul.f32 %v1094_v16, %v1088_v17 }
 0x826   : > { %1098 = vrot.lane.b32.xlu1 %v1096_v18, %s2150_s14 }
 0x86c   : > { %v1159_v20 = vpop.permute.xlu0 %1158 }
 0x86d   : > { %v1161_v21 = vadd.f32 %v1159_v20, %v1151_v19 }
 0x86f   : > { %1762 = vtanh.f32 %v1161_v21 }
 0x875   : > { %v1763_v22 = vpop.eup %1762 }
 0x876   : > { %1164 = vrot.lane.b32.xlu2 %v1763_v22, %s2149_s28 }
 0x898   : > { %v1099_v24 = vpop.permute.xlu1 %1098 }
 0x899   : > { %v1101_v25 = vadd.f32 %v1099_v24, %v1091_v23 }
 0x89b   : > { %1764 = vtanh.f32 %v1101_v25 }
 0x8a1   : > { %v1765_v26 = vpop.eup %1764 }
 0x8a2   : > { %1104 = vrot.lane.b32.xlu0 %v1765_v26, %s2149_s28 }
 0x8d0   : > { %v1165_v27 = vpop.permute.xlu2 %1164 }
 0x8d1   : > { %v1167_v28 = vmul.f32 %v1165_v27, %v1148_v1 }
 0x8d3   : > { %1169 = vrot.lane.b32.xlu1 %v1167_v28, %s2150_s14 }
 0x914   : > { %v1105_v30 = vpop.permute.xlu0 %1104 }
 0x915   : > { %v1107_v29 = vmul.f32 %v1105_v30, %v1088_v17 }
 0x917   : > { %1194 = vrot.lane.b32.xlu2 %v1107_v29, %s2150_s14 }
 0x945   : > { %v1170_v31 = vpop.permute.xlu1 %1169 }
 0x946   : > { %1257 = vst.msk [vmem:[#allocation2] sm:$0xff] %vm587_vm1, %v1170_v31  ;;  %1550 = vmatmul.msk.f32.vlgmr.msrb.gmra.mxu2 %vm587_vm1, %v1170_v31 }
 0x971   : > { %v1195_v32 = vpop.permute.xlu2 %1194 }
 0x972   : > { %1551 = vmatmul.msk.f32.vlgmr.msrb.gmra.mxu3 %vm587_vm1, %v1195_v32 }
 0x9c9   : > { %v1190_v33 = vpop.f32.mrf.mxu2 }
 0x9ca   : > { %v1191_v34 = vadd.f32 %v2469_v59, %v1190_v33 }
 0x9f5   : > { %v1215_v36 = vpop.f32.mrf.mxu3 }
 0x9f6   : > { %v1218_v35 = vadd.f32 %v1215_v36, %v1191_v34 }
 0x9f8   : > { %1766 = vtanh.f32 %v1218_v35  ;;  %v1552_v38 = vmul.f32 -1.442695, %v1218_v35 }
 0x9fa   : > { %1768 = vpow2.f32 %v1552_v38 }
 0x9fe   : > { %v1767_v37 = vpop.eup %1766 }
 0x9ff   : > { %1241 = vrot.lane.b32.xlu0 %v1767_v37, %s2149_s28 }
 0xa00   : > { %v1769_v40 = vpop.eup %1768 }
 0xa01   : > { %v1222_v45 = vadd.f32 1.0, %v1769_v40 }
 0xa03   : > { %1770 = vrcp.f32 %v1222_v45  ;;  %v1234_v59 = vand.u32 2147483648, %v1222_v45  ;;  %vm1228_vm0 = vweird.f32 %v1222_v45  ;;  %v1232_v54 = vand.u32 2147483647, %v1222_v45 }
 0xa05   : > { %v1235_v56 = vor.u32 1.1754944e-38, %v1234_v59  ;;  %vm1233_vm3 = vcmp.eq.f32.partialorder %v1232_v54, 8.507059e+37 }
 0xa07   : > { %1259 = vrot.lane.b32.xlu0 %v1161_v21, %s2151_s16 }
 0xa09   : > { %v1771_v49 = vpop.eup %1770 }
 0xa0a   : > { %v1224_v39 = vmul.f32 %v1771_v49, %v1222_v45  ;;  %vm1229_vm15 = vweird.f32 %v1771_v49 }
 0xa0b   : > { %vm1230_vm2 = vmor %vm1228_vm0, %vm1229_vm15 }
 0xa0c   : > { %v1225_v50 = vsub.f32 1.0, %v1224_v39 }
 0xa0e   : > { %v1226_v52 = vmul.f32 %v1771_v49, %v1225_v50 }
 0xa10   : > { %v1227_v53 = vadd.f32 %v1771_v49, %v1226_v52 }
 0xa12   : > { %v1231_v55 = vsel %vm1230_vm2, %v1771_v49, %v1227_v53 }
 0xa13   : > { %v1236_v41 = vsel %vm1233_vm3, %v1235_v56, %v1231_v55 }
 0xa14   : > { %v1239_v46 = vmul.f32 %v1236_v41, %v1101_v25 }
 0xa71   : > { %v1242_v57 = vpop.permute.xlu0 %1241 }
 0xa72   : > { %v1244_v58 = vmul.f32 %v1242_v57, %v1236_v41 }
 0xa74   : > { %1246 = vrot.lane.b32.xlu1 %v1244_v58, %s2150_s14 }
 0xa79   : > { %v1260_v42 = vpop.permute.xlu0 %1259 }
 0xa7a   : > { %1262 = vst.msk [vmem:[#allocation3] sm:$0xff] %vm587_vm1, %v1260_v42 }
 0xae6   : > { %v1247_v48 = vpop.permute.xlu1 %1246 }
 0xae7   : > { %v1249_v14 = vadd.f32 %v1247_v48, %v1239_v46 }
 0xae9   : > { %1772 = vtanh.f32 %v1249_v14 }
 0xaef   : > { %v1773_v60 = vpop.eup %1772 }
 0xaf0   : > { %1252 = vrot.lane.b32.xlu2 %v1773_v60, %s2149_s28 }
 0xaf8   : > { %1269 = vrot.lane.b32.xlu2 %v1249_v14, %s2151_s16 }
 0xb4a   : > { %v1253_v61 = vpop.permute.xlu2 %1252 }
 0xb4b   : > { %v1255_v43 = vmul.f32 %v1253_v61, %v1236_v41 }
 0xb4d   : > { %1264 = vrot.lane.b32.xlu1 %v1255_v43, %s2150_s14 }
 0xb52   : > { %v1270_v44 = vpop.permute.xlu2 %1269 }
 0xb53   : > { %1272 = vst.msk [vmem:[#allocation3 + $0x8] sm:$0xff] %vm587_vm1, %v1270_v44 }
 0xbbc   : > { %1276 = sbr.rel (%p1553_p1) target bundleno = 3146 (0xc4a), region = 96 }
 0xbbf   : > { %v1265_v47 = vpop.permute.xlu1 %1264 }
 0xbc0   : > { %1267 = vst.msk [vmem:[#allocation2 + $0x8] sm:$0xff] %vm587_vm1, %v1265_v47 }
 0xbc1   : > { %1277 = vst.msk [vmem:[#allocation17] sm:$0xff] %vm587_vm1, %v1170_v31  ;;  %v1286_v51 = vld [vmem:[#allocation16 + $0x18] sm:$0xff]  ;;  %v1285_v62 = vld [vmem:[#allocation16 + $0x10] sm:$0xff]  ;;  %v1284_v63 = vld [vmem:[#allocation16 + $0x8] sm:$0xff] }
 0xbc2   : > { %1278 = vst.msk [vmem:[#allocation18] sm:$0xff] %vm587_vm1, %v1260_v42  ;;  %1305 = vmatpush.msra.mxu0 %v1286_v51  ;;  %v1283_v0 = vld [vmem:[#allocation16] sm:$0xff] }
 0xbc3   : > { %1280 = vst.msk [vmem:[#allocation17 + $0x8] sm:$0xff] %vm587_vm1, %v1265_v47  ;;  %v1774_v1 = vld [vmem:[%s2613_s9] ss:$0 sm:$0xff] }
 0xbc4   : > { %1282 = vst.msk [vmem:[#allocation18 + $0x8] sm:$0xff] %vm587_vm1, %v1270_v44  ;;  %1306 = vmatpush.msra.mxu0 %v1285_v62 }
 0xbc6   : > { %1307 = vmatpush.msra.mxu0 %v1284_v63 }
 0xbc8   : > { %1308 = vmatpush.msra.mxu0 %v1283_v0 }
 0xbc9   : > { %1554 = vmatmul.msk.f32.vlgmr.msra.gmra.mxu0 %vm587_vm1, %v1265_v47 }
 0xc46   : > { %v1310_v2 = vpop.f32.mrf.mxu0 }
 0xc47   : > { %v1311_v3 = vadd.f32 %v1774_v1, %v1310_v2 }
 0xc49   : > { %1313 = vst [vmem:[#allocation20] sm:$0xff] %v1311_v3 }
 0xc4a PF: > { %s2638_s20 = sadd.s32 4294967295, %s2139_s26   ;;  %s2152_s18 = smov [#allocation18]  }
 0xc4b   : > { %p2559_p3 = scmp.eq.s32.totalorder %s2638_s20, 1  ;;  %s1337_s19 = sshll.u32 %s2152_s18, 4  ;;  %s1338_s19 = int_to_ptr.vmem [resolvable:$true] %s1337_s19 }
 0xc4c   : > { %s2640_s12 = sld [smem:[#allocation32_spill]]  ;;  %s2153_s21 = smov 128  }
 0xc4d   : > { %s2154_s10 = smov 8   ;;  %s2155_s3 = smov [#allocation17]  }
 0xc4e   : > { %s1321_s6 = sshll.u32 %s2155_s3, 4  ;;  %s2641_s29 = sld [smem:[#allocation31_spill]]  ;;  %s1322_s6 = int_to_ptr.vmem [resolvable:$true] %s1321_s6 }
 0xc4f   : > { %s2642_s17 = sld [smem:[#allocation33_spill]]  ;;  %s2156_s18 = smov [#allocation20]  }
 0xc50   : > { %s1354_s13 = sshll.u32 %s2156_s18, 4  ;;  %s1355_s13 = int_to_ptr.vmem [resolvable:$true] %s1354_s13 }
 0xc52   : > { %s1339_s27 = sshll.u32 %s2640_s12, 4  ;;  %s1340_s27 = int_to_ptr.hbm [resolvable:$true] %s1339_s27 }
 0xc53   : > { %1593 = dma.vmem_to_hbm [thread:$0]  (%p2559_p3), %s1338_s19, 256, %s1340_s27, [#allocation19], %s2153_s21, %s2153_s21, %s2154_s10  }
 0xc54   : > { %s1323_s30 = sshll.u32 %s2641_s29, 4  ;;  %s1324_s30 = int_to_ptr.hbm [resolvable:$true] %s1323_s30 }
 0xc55   : > { %1591 = dma.vmem_to_hbm [thread:$0]  (%p2559_p3), %s1322_s6, 256, %s1324_s30, [#allocation7], %s2153_s21, %s2153_s21, %s2154_s10  }
 0xc56   : > { %s1356_s20 = sshll.u32 %s2642_s17, 4  ;;  %s1357_s20 = int_to_ptr.hbm [resolvable:$true] %s1356_s20 }
 0xc57   : > { %1595 = dma.vmem_to_hbm [thread:$0]  (%p2559_p3), %s1355_s13, 128, %s1357_s20, [#allocation19]  }
 0xc58   : > { %2110 = dma.done.wait (%p2559_p3), [#allocation7], 256  }
 0xc59   : > { %2112 = vsyncadd (%p2559_p3), [#allocation7], 4294967040 }
 0xc5a   : > { %2114 = dma.done.wait (%p2559_p3), [#allocation19], 384  }
 0xc5b   : > { %2116 = vsyncadd (%p2559_p3), [#allocation19], 4294966912 }
 0xc5c PF: > { %s31_s26 = sadd.s32 1, %s2139_s26   ;;  %s2643_s21 = smov %s2123_s22 }
 0xc5d   : > { %p28_p4 = scmp.ge.s32.totalorder %s31_s26, 4   ;;  %s2644_s22 = smov %s2127_s23 }
 0xc5e   : > { %s2645_s23 = smov %s2345_s11  ;;  %s2646_s24 = smov %s2135_s25 }
 0xc5f   : > { %s2647_s25 = smov %s2649_s1  ;;  %30 = sbr.rel (!%p28_p4) target bundleno = 17 (0x11), region = 158 }
 0xc64   :  { %1380 = vsyncpa [#allocation6], 1 }
 0xc65   :  { %1382 = vsyncpa [#allocation6 + $0x1], 1 }
 0xc66   :  { %1383 = vsyncpa [#allocation9], 1 }
 0xc67   :  { %1384 = vsyncpa [#allocation12], 1 }
 0xc68   :  { %1385 = vsyncpa [#allocation15], 1 }
 0xc69   :  { %1386 = vsyncpa [#allocation7], 1 }
 0xc6a   :  { %1388 = vsyncpa [#allocation7 + $0x1], 1 }
 0xc6b   :  { %1389 = vsyncpa [#allocation19], 1 }

</bundles_post_ra>
